<compile_context>
chip_gen: v6e
topology: v6e:2x2x1
jax: 0.10.0
libtpu: 0.0.40
codegen_flags: <defaults>
</compile_context>

<pallas_src>
import jax
import jax.numpy as jnp
from jax import lax
from jax.experimental import pallas as pl
from jax.experimental.pallas import tpu as pltpu


# ------------------------------- fused kernel --------------------------------

def _fused_hmn_kernel(x_ref, heat_ref, enc_w_ref, enc_b_ref,
                      blk_w_ref, blk_b_ref, head_w_ref, head_b_ref, o_ref):
    Bt, N, Dp_in = x_ref.shape
    Hp = enc_w_ref.shape[1]
    L = blk_w_ref.shape[0]

    # ---- node encoder over the stacked (Bt*N, Dp_in) slab: one MXU call -----
    x_slab = x_ref[...].reshape(Bt * N, Dp_in)                       # bf16
    h = jnp.dot(x_slab, enc_w_ref[...],
                preferred_element_type=jnp.float32) + enc_b_ref[...]  # f32, vreg-resident

    # ---- HeatConvBlocks: h <- relu(H @ (h @ W_l) + b_l) ----------------------
    def layer_body(l, h):
        # X @ W over the whole slab (Bt graphs at once).
        hw = jnp.dot(h.astype(jnp.bfloat16), blk_w_ref[l],
                     preferred_element_type=jnp.float32)             # (Bt*N, Hp)
        # Per-graph heat propagation H @ (XW); heat stays VMEM-resident and is
        # reused by every layer.
        hw3 = hw.astype(jnp.bfloat16).reshape(Bt, N, Hp)
        hx = jnp.einsum("bnm,bmk->bnk", heat_ref[...], hw3,
                        preferred_element_type=jnp.float32)          # (Bt, N, Hp)
        return jnp.maximum(hx.reshape(Bt * N, Hp) + blk_b_ref[l], 0.0)

    h = lax.fori_loop(0, L, layer_body, h, unroll=True)

    # ---- graph head: mean-pool over nodes + linear (all Bt graphs at once) ---
    pooled = h.reshape(Bt, N, Hp).sum(axis=1) * (1.0 / N)            # (Bt, Hp) f32
    y = jnp.dot(pooled.astype(jnp.bfloat16), head_w_ref[...],
                preferred_element_type=jnp.float32) + head_b_ref[...]
    o_ref[0] = y.astype(o_ref.dtype)


# ------------------------------- wrapper --------------------------------------

def hmn_forward(x, heat, enc_w, enc_b, blk_w, blk_b, head_w, head_b,
                dim_out, graphs_per_step):
    """Fused HMN forward.

    x      : (B, N, Dp_in)  node features, last dim zero-padded to 128
    heat   : (B, N, N)      per-graph dense heat operator
    enc_w  : (Dp_in, Hp)    zero-padded, Hp multiple of 128
    enc_b  : (1, Hp)
    blk_w  : (L, Hp, Hp)    stacked weights of all layers_block*n_layers layers
    blk_b  : (L, 1, Hp)
    head_w : (Hp, Dp)       Dp padded to 128
    head_b : (1, Dp)
    graphs_per_step : graphs per grid step (use B on v5e/v6e, B//2 on v7x)
    returns (B, dim_out)
    """
    B, N, Dp_in = x.shape
    Hp = enc_w.shape[1]
    Dp = head_w.shape[1]
    L = blk_w.shape[0]
    assert B % graphs_per_step == 0
    Bt = graphs_per_step
    steps = B // Bt

    # bf16 MXU operands (accumulation is f32 inside the kernel); biases stay f32.
    x = x.astype(jnp.bfloat16)
    heat = heat.astype(jnp.bfloat16)
    enc_w = enc_w.astype(jnp.bfloat16)
    blk_w = blk_w.astype(jnp.bfloat16)
    head_w = head_w.astype(jnp.bfloat16)
    enc_b = enc_b.astype(jnp.float32)
    blk_b = blk_b.astype(jnp.float32)
    head_b = head_b.astype(jnp.float32)

    out = pl.pallas_call(
        _fused_hmn_kernel,
        out_shape=jax.ShapeDtypeStruct((steps, Bt, Dp), jnp.float32),
        grid=(steps,),
        in_specs=[
            pl.BlockSpec((Bt, N, Dp_in), lambda s: (s, 0, 0)),   # x (Bt graphs/step)
            pl.BlockSpec((Bt, N, N), lambda s: (s, 0, 0)),       # heat
            pl.BlockSpec((Dp_in, Hp), lambda s: (0, 0)),         # enc_w (constant idx)
            pl.BlockSpec((1, Hp), lambda s: (0, 0)),             # enc_b
            pl.BlockSpec((L, Hp, Hp), lambda s: (0, 0, 0)),      # blk_w (all layers)
            pl.BlockSpec((L, 1, Hp), lambda s: (0, 0, 0)),       # blk_b
            pl.BlockSpec((Hp, Dp), lambda s: (0, 0)),            # head_w
            pl.BlockSpec((1, Dp), lambda s: (0, 0)),             # head_b
        ],
        out_specs=pl.BlockSpec((1, Bt, Dp), lambda s: (s, 0, 0)),
        compiler_params=pltpu.CompilerParams(
            dimension_semantics=("parallel",)),                  # v7x: 1 step per TC
    )(x, heat, enc_w, enc_b, blk_w, blk_b, head_w, head_b)

    return out.reshape(B, Dp)[:, :dim_out]


# ------------------------------- params / inputs ------------------------------

def _pad_to(a, shape):
    pads = [(0, t - s) for s, t in zip(a.shape, shape)]
    return jnp.pad(a, pads)


def init_params(key, dim_in, hidden, dim_out, layers_block, n_layers,
                din_pad, hidden_pad, out_pad):
    """Logical params (unpadded) + lane-dense padded copies for the kernel."""
    keys = jax.random.split(key, 2 + layers_block * n_layers)
    ki = iter(keys)

    enc_w = jax.random.normal(next(ki), (dim_in, hidden), jnp.float32) * 0.1
    enc_b = jnp.zeros((1, hidden), jnp.float32)

    blk_ws, blk_bs = [], []
    for _ in range(layers_block * n_layers):
        blk_ws.append(jax.random.normal(next(ki), (hidden, hidden), jnp.float32) * 0.1)
        blk_bs.append(jnp.zeros((1, hidden), jnp.float32))

    head_w = jax.random.normal(next(ki), (hidden, dim_out), jnp.float32) * 0.1
    head_b = jnp.zeros((1, dim_out), jnp.float32)

    logical = dict(enc_w=enc_w, enc_b=enc_b, blk_ws=blk_ws, blk_bs=blk_bs,
                   head_w=head_w, head_b=head_b)

    padded = dict(
        enc_w=_pad_to(enc_w, (din_pad, hidden_pad)),
        enc_b=_pad_to(enc_b, (1, hidden_pad)),
        blk_w=jnp.stack([_pad_to(w, (hidden_pad, hidden_pad)) for w in blk_ws]),
        blk_b=jnp.stack([_pad_to(b, (1, hidden_pad)) for b in blk_bs]),
        head_w=_pad_to(head_w, (hidden_pad, out_pad)),
        head_b=_pad_to(head_b, (1, out_pad)),
    )
    return logical, padded


def build_heat_operator(key, B, N):
    """Symmetric-normalized (A ∪ I) acting as the heat-propagation operator."""
    adj = (jax.random.uniform(key, (B, N, N)) < 0.15).astype(jnp.float32)
    adj = jnp.maximum(adj, jnp.transpose(adj, (0, 2, 1)))           # symmetrize
    adj = jnp.maximum(adj, jnp.eye(N, dtype=jnp.float32)[None])     # self-loops
    deg = jnp.sum(adj, axis=-1)
    d_inv_sqrt = 1.0 / jnp.sqrt(deg)
    return adj * d_inv_sqrt[:, :, None] * d_inv_sqrt[:, None, :]


def reference_forward(x, heat, p, mm_dtype=jnp.float32):
    """Pure-JAX reference (unpadded params). mm_dtype mimics the kernel's
    bf16 matmul operands with f32 accumulation when set to bfloat16."""
    c = lambda a: a.astype(mm_dtype)
    h = jnp.einsum("bnd,dh->bnh", c(x), c(p["enc_w"]),
                   preferred_element_type=jnp.float32) + p["enc_b"]
    for w, b in zip(p["blk_ws"], p["blk_bs"]):
        hw = jnp.einsum("bnh,hk->bnk", c(h), c(w),
                        preferred_element_type=jnp.float32)
        h = jnp.maximum(jnp.einsum("bnm,bmk->bnk", c(heat), c(hw),
                                   preferred_element_type=jnp.float32) + b, 0.0)
    pooled = jnp.mean(h, axis=1)
    return jnp.einsum("bh,ho->bo", c(pooled), c(p["head_w"]),
                      preferred_element_type=jnp.float32) + p["head_b"]


# ------------------------------- main ------------------------------------------

if __name__ == "__main__":
    # cfg-implied small configuration
    B = 4              # graphs in batch
    N = 64             # nodes per graph
    DIM_IN = 16        # raw node feature dim (logical)
    HIDDEN = 32        # cfg.gnn.dim_inner (logical)
    DIM_OUT = 8        # task output dim (logical)
    LAYERS_BLOCK = 2   # cfg.gnn.layers_block
    N_LAYERS = 2       # cfg.gnn.HeatConvBlock_n_layers
    DINP = 128         # lane-dense padded input dim
    HP = 128           # lane-dense padded hidden
    DP = 128           # lane-dense padded output

    # 2 graphs per step -> grid=(2,): keeps both v7x TensorCores busy while the
    # stacked 128-row slab fills MXU sublanes.  On v5e/v6e set this to B (1 step).
    GRAPHS_PER_STEP = max(1, B // 2)

    key = jax.random.PRNGKey(0)
    k_x, k_a, k_p = jax.random.split(key, 3)

    x = jax.random.normal(k_x, (B, N, DIM_IN), jnp.float32)
    heat = build_heat_operator(k_a, B, N)
    logical, padded = init_params(k_p, DIM_IN, HIDDEN, DIM_OUT,
                                  LAYERS_BLOCK, N_LAYERS, DINP, HP, DP)

    # Host-side zero-pad of the raw feature dim -> lane-dense encoder load.
    x_pad = jnp.pad(x, ((0, 0), (0, 0), (0, DINP - DIM_IN)))

    out = hmn_forward(
        x_pad, heat,
        padded["enc_w"], padded["enc_b"],
        padded["blk_w"], padded["blk_b"],
        padded["head_w"], padded["head_b"],
        DIM_OUT, GRAPHS_PER_STEP,
    )
    out = jax.block_until_ready(out)
    assert out.shape == (B, DIM_OUT)

    # Correctness: tight check vs a bf16-operand reference (same math as kernel),
    # loose check vs the pure-f32 reference (bf16 drift bound).
    ref_bf16 = reference_forward(x, heat, logical, jnp.bfloat16)
    ref_f32 = reference_forward(x, heat, logical, jnp.float32)

    def relerr(a, b):
        return float(jnp.max(jnp.abs(a - b)) / (jnp.max(jnp.abs(b)) + 1e-6))

    assert relerr(out, ref_bf16) < 1e-2, "mismatch vs bf16 reference"
    assert relerr(out, ref_f32) < 5e-2, "mismatch vs f32 reference"

    print("KERNEL_OK")
</pallas_src>

<mosaic_0001>
module attributes {stable_mosaic.version = 11 : i64} {
  func.func @_fused_hmn_kernel(%arg0: i32, %arg1: memref<2x64x128xbf16, #tpu.memory_space<vmem>>, %arg2: memref<2x64x64xbf16, #tpu.memory_space<vmem>>, %arg3: memref<128x128xbf16, #tpu.memory_space<vmem>>, %arg4: memref<1x128xf32, #tpu.memory_space<vmem>>, %arg5: memref<4x128x128xbf16, #tpu.memory_space<vmem>>, %arg6: memref<4x1x128xf32, #tpu.memory_space<vmem>>, %arg7: memref<128x128xbf16, #tpu.memory_space<vmem>>, %arg8: memref<1x128xf32, #tpu.memory_space<vmem>>, %arg9: memref<1x2x128xf32, #tpu.memory_space<vmem>>) attributes {dimension_semantics = [#tpu.dimension_semantics<parallel>], iteration_bounds = array<i64: 2>, scalar_prefetch = 0 : i64, scratch_operands = 0 : i64, tpu.core_type = #tpu.core_type<tc>, window_params = [{transform_indices = @transform_0, window_bounds = array<i64: 2, 64, 128>}, {transform_indices = @transform_1, window_bounds = array<i64: 2, 64, 64>}, {pipeline_mode = #tpu.pipeline_mode<synchronous>, transform_indices = @transform_2, window_bounds = array<i64: 128, 128>}, {pipeline_mode = #tpu.pipeline_mode<synchronous>, transform_indices = @transform_3, window_bounds = array<i64: 1, 128>}, {pipeline_mode = #tpu.pipeline_mode<synchronous>, transform_indices = @transform_4, window_bounds = array<i64: 4, 128, 128>}, {pipeline_mode = #tpu.pipeline_mode<synchronous>, transform_indices = @transform_5, window_bounds = array<i64: 4, 1, 128>}, {pipeline_mode = #tpu.pipeline_mode<synchronous>, transform_indices = @transform_6, window_bounds = array<i64: 128, 128>}, {pipeline_mode = #tpu.pipeline_mode<synchronous>, transform_indices = @transform_7, window_bounds = array<i64: 1, 128>}, {transform_indices = @transform_8, window_bounds = array<i64: 1, 2, 128>}]} {
    %c0 = arith.constant 0 : index
    %c0_0 = arith.constant 0 : index
    %c0_1 = arith.constant 0 : index
    %0 = vector.load %arg1[%c0, %c0_0, %c0_1] : memref<2x64x128xbf16, #tpu.memory_space<vmem>>, vector<2x64x128xbf16>
    %1 = vector.shape_cast %0 : vector<2x64x128xbf16> to vector<128x128xbf16>
    %c0_2 = arith.constant 0 : index
    %c0_3 = arith.constant 0 : index
    %2 = vector.load %arg3[%c0_2, %c0_3] : memref<128x128xbf16, #tpu.memory_space<vmem>>, vector<128x128xbf16>
    %cst = arith.constant dense<0.000000e+00> : vector<128x128xf32>
    %3 = tpu.matmul %1, %2, %cst {dimension_numbers = #tpu.dot_dimension_numbers<[1], [0], [0], [1], [0, 0, 1, 1], [], []>} : vector<128x128xbf16>, vector<128x128xbf16>, vector<128x128xf32> -> vector<128x128xf32>
    %c0_4 = arith.constant 0 : index
    %c0_5 = arith.constant 0 : index
    %4 = vector.load %arg4[%c0_4, %c0_5] : memref<1x128xf32, #tpu.memory_space<vmem>>, vector<1x128xf32>
    %5 = vector.broadcast %4 : vector<1x128xf32> to vector<128x128xf32>
    %6 = arith.addf %3, %5 : vector<128x128xf32>
    %c0_i32 = arith.constant 0 : i32
    %7 = arith.truncf %6 : vector<128x128xf32> to vector<128x128xbf16>
    %8 = arith.index_cast %c0_i32 : i32 to index
    %c0_6 = arith.constant 0 : index
    %c0_7 = arith.constant 0 : index
    %9 = vector.load %arg5[%8, %c0_6, %c0_7] : memref<4x128x128xbf16, #tpu.memory_space<vmem>>, vector<1x128x128xbf16>
    %10 = vector.shape_cast %9 : vector<1x128x128xbf16> to vector<128x128xbf16>
    %cst_8 = arith.constant dense<0.000000e+00> : vector<128x128xf32>
    %11 = tpu.matmul %7, %10, %cst_8 {dimension_numbers = #tpu.dot_dimension_numbers<[1], [0], [0], [1], [0, 0, 1, 1], [], []>} : vector<128x128xbf16>, vector<128x128xbf16>, vector<128x128xf32> -> vector<128x128xf32>
    %12 = arith.truncf %11 : vector<128x128xf32> to vector<128x128xbf16>
    %13 = vector.shape_cast %12 : vector<128x128xbf16> to vector<2x64x128xbf16>
    %c0_9 = arith.constant 0 : index
    %c0_10 = arith.constant 0 : index
    %c0_11 = arith.constant 0 : index
    %14 = vector.load %arg2[%c0_9, %c0_10, %c0_11] : memref<2x64x64xbf16, #tpu.memory_space<vmem>>, vector<2x64x64xbf16>
    "tpu.trace_start"() <{level = 10 : i32, message = "bnm,bmk->bnk"}> : () -> ()
    %cst_12 = arith.constant dense<0.000000e+00> : vector<2x64x128xf32>
    %15 = tpu.matmul %14, %13, %cst_12 {dimension_numbers = #tpu.dot_dimension_numbers<[2], [1], [1], [2], [0, 0, 0, 1, 1, 2], [0], [0]>} : vector<2x64x64xbf16>, vector<2x64x128xbf16>, vector<2x64x128xf32> -> vector<2x64x128xf32>
    "tpu.trace_stop"() : () -> ()
    %16 = vector.shape_cast %15 : vector<2x64x128xf32> to vector<128x128xf32>
    %17 = arith.index_cast %c0_i32 : i32 to index
    %c0_13 = arith.constant 0 : index
    %c0_14 = arith.constant 0 : index
    %18 = vector.load %arg6[%17, %c0_13, %c0_14] : memref<4x1x128xf32, #tpu.memory_space<vmem>>, vector<1x1x128xf32>
    %19 = vector.shape_cast %18 : vector<1x1x128xf32> to vector<1x128xf32>
    %20 = vector.broadcast %19 : vector<1x128xf32> to vector<128x128xf32>
    %21 = arith.addf %16, %20 : vector<128x128xf32>
    %cst_15 = arith.constant 0.000000e+00 : f32
    %22 = vector.broadcast %cst_15 : f32 to vector<128x128xf32>
    %23 = arith.maximumf %21, %22 : vector<128x128xf32>
    %c1_i32 = arith.constant 1 : i32
    %24 = arith.truncf %23 : vector<128x128xf32> to vector<128x128xbf16>
    %25 = arith.index_cast %c1_i32 : i32 to index
    %c0_16 = arith.constant 0 : index
    %c0_17 = arith.constant 0 : index
    %26 = vector.load %arg5[%25, %c0_16, %c0_17] : memref<4x128x128xbf16, #tpu.memory_space<vmem>>, vector<1x128x128xbf16>
    %27 = vector.shape_cast %26 : vector<1x128x128xbf16> to vector<128x128xbf16>
    %cst_18 = arith.constant dense<0.000000e+00> : vector<128x128xf32>
    %28 = tpu.matmul %24, %27, %cst_18 {dimension_numbers = #tpu.dot_dimension_numbers<[1], [0], [0], [1], [0, 0, 1, 1], [], []>} : vector<128x128xbf16>, vector<128x128xbf16>, vector<128x128xf32> -> vector<128x128xf32>
    %29 = arith.truncf %28 : vector<128x128xf32> to vector<128x128xbf16>
    %30 = vector.shape_cast %29 : vector<128x128xbf16> to vector<2x64x128xbf16>
    %c0_19 = arith.constant 0 : index
    %c0_20 = arith.constant 0 : index
    %c0_21 = arith.constant 0 : index
    %31 = vector.load %arg2[%c0_19, %c0_20, %c0_21] : memref<2x64x64xbf16, #tpu.memory_space<vmem>>, vector<2x64x64xbf16>
    "tpu.trace_start"() <{level = 10 : i32, message = "bnm,bmk->bnk"}> : () -> ()
    %cst_22 = arith.constant dense<0.000000e+00> : vector<2x64x128xf32>
    %32 = tpu.matmul %31, %30, %cst_22 {dimension_numbers = #tpu.dot_dimension_numbers<[2], [1], [1], [2], [0, 0, 0, 1, 1, 2], [0], [0]>} : vector<2x64x64xbf16>, vector<2x64x128xbf16>, vector<2x64x128xf32> -> vector<2x64x128xf32>
    "tpu.trace_stop"() : () -> ()
    %33 = vector.shape_cast %32 : vector<2x64x128xf32> to vector<128x128xf32>
    %34 = arith.index_cast %c1_i32 : i32 to index
    %c0_23 = arith.constant 0 : index
    %c0_24 = arith.constant 0 : index
    %35 = vector.load %arg6[%34, %c0_23, %c0_24] : memref<4x1x128xf32, #tpu.memory_space<vmem>>, vector<1x1x128xf32>
    %36 = vector.shape_cast %35 : vector<1x1x128xf32> to vector<1x128xf32>
    %37 = vector.broadcast %36 : vector<1x128xf32> to vector<128x128xf32>
    %38 = arith.addf %33, %37 : vector<128x128xf32>
    %cst_25 = arith.constant 0.000000e+00 : f32
    %39 = vector.broadcast %cst_25 : f32 to vector<128x128xf32>
    %40 = arith.maximumf %38, %39 : vector<128x128xf32>
    %c2_i32 = arith.constant 2 : i32
    %41 = arith.truncf %40 : vector<128x128xf32> to vector<128x128xbf16>
    %42 = arith.index_cast %c2_i32 : i32 to index
    %c0_26 = arith.constant 0 : index
    %c0_27 = arith.constant 0 : index
    %43 = vector.load %arg5[%42, %c0_26, %c0_27] : memref<4x128x128xbf16, #tpu.memory_space<vmem>>, vector<1x128x128xbf16>
    %44 = vector.shape_cast %43 : vector<1x128x128xbf16> to vector<128x128xbf16>
    %cst_28 = arith.constant dense<0.000000e+00> : vector<128x128xf32>
    %45 = tpu.matmul %41, %44, %cst_28 {dimension_numbers = #tpu.dot_dimension_numbers<[1], [0], [0], [1], [0, 0, 1, 1], [], []>} : vector<128x128xbf16>, vector<128x128xbf16>, vector<128x128xf32> -> vector<128x128xf32>
    %46 = arith.truncf %45 : vector<128x128xf32> to vector<128x128xbf16>
    %47 = vector.shape_cast %46 : vector<128x128xbf16> to vector<2x64x128xbf16>
    %c0_29 = arith.constant 0 : index
    %c0_30 = arith.constant 0 : index
    %c0_31 = arith.constant 0 : index
    %48 = vector.load %arg2[%c0_29, %c0_30, %c0_31] : memref<2x64x64xbf16, #tpu.memory_space<vmem>>, vector<2x64x64xbf16>
    "tpu.trace_start"() <{level = 10 : i32, message = "bnm,bmk->bnk"}> : () -> ()
    %cst_32 = arith.constant dense<0.000000e+00> : vector<2x64x128xf32>
    %49 = tpu.matmul %48, %47, %cst_32 {dimension_numbers = #tpu.dot_dimension_numbers<[2], [1], [1], [2], [0, 0, 0, 1, 1, 2], [0], [0]>} : vector<2x64x64xbf16>, vector<2x64x128xbf16>, vector<2x64x128xf32> -> vector<2x64x128xf32>
    "tpu.trace_stop"() : () -> ()
    %50 = vector.shape_cast %49 : vector<2x64x128xf32> to vector<128x128xf32>
    %51 = arith.index_cast %c2_i32 : i32 to index
    %c0_33 = arith.constant 0 : index
    %c0_34 = arith.constant 0 : index
    %52 = vector.load %arg6[%51, %c0_33, %c0_34] : memref<4x1x128xf32, #tpu.memory_space<vmem>>, vector<1x1x128xf32>
    %53 = vector.shape_cast %52 : vector<1x1x128xf32> to vector<1x128xf32>
    %54 = vector.broadcast %53 : vector<1x128xf32> to vector<128x128xf32>
    %55 = arith.addf %50, %54 : vector<128x128xf32>
    %cst_35 = arith.constant 0.000000e+00 : f32
    %56 = vector.broadcast %cst_35 : f32 to vector<128x128xf32>
    %57 = arith.maximumf %55, %56 : vector<128x128xf32>
    %c3_i32 = arith.constant 3 : i32
    %58 = arith.truncf %57 : vector<128x128xf32> to vector<128x128xbf16>
    %59 = arith.index_cast %c3_i32 : i32 to index
    %c0_36 = arith.constant 0 : index
    %c0_37 = arith.constant 0 : index
    %60 = vector.load %arg5[%59, %c0_36, %c0_37] : memref<4x128x128xbf16, #tpu.memory_space<vmem>>, vector<1x128x128xbf16>
    %61 = vector.shape_cast %60 : vector<1x128x128xbf16> to vector<128x128xbf16>
    %cst_38 = arith.constant dense<0.000000e+00> : vector<128x128xf32>
    %62 = tpu.matmul %58, %61, %cst_38 {dimension_numbers = #tpu.dot_dimension_numbers<[1], [0], [0], [1], [0, 0, 1, 1], [], []>} : vector<128x128xbf16>, vector<128x128xbf16>, vector<128x128xf32> -> vector<128x128xf32>
    %63 = arith.truncf %62 : vector<128x128xf32> to vector<128x128xbf16>
    %64 = vector.shape_cast %63 : vector<128x128xbf16> to vector<2x64x128xbf16>
    %c0_39 = arith.constant 0 : index
    %c0_40 = arith.constant 0 : index
    %c0_41 = arith.constant 0 : index
    %65 = vector.load %arg2[%c0_39, %c0_40, %c0_41] : memref<2x64x64xbf16, #tpu.memory_space<vmem>>, vector<2x64x64xbf16>
    "tpu.trace_start"() <{level = 10 : i32, message = "bnm,bmk->bnk"}> : () -> ()
    %cst_42 = arith.constant dense<0.000000e+00> : vector<2x64x128xf32>
    %66 = tpu.matmul %65, %64, %cst_42 {dimension_numbers = #tpu.dot_dimension_numbers<[2], [1], [1], [2], [0, 0, 0, 1, 1, 2], [0], [0]>} : vector<2x64x64xbf16>, vector<2x64x128xbf16>, vector<2x64x128xf32> -> vector<2x64x128xf32>
    "tpu.trace_stop"() : () -> ()
    %67 = vector.shape_cast %66 : vector<2x64x128xf32> to vector<128x128xf32>
    %68 = arith.index_cast %c3_i32 : i32 to index
    %c0_43 = arith.constant 0 : index
    %c0_44 = arith.constant 0 : index
    %69 = vector.load %arg6[%68, %c0_43, %c0_44] : memref<4x1x128xf32, #tpu.memory_space<vmem>>, vector<1x1x128xf32>
    %70 = vector.shape_cast %69 : vector<1x1x128xf32> to vector<1x128xf32>
    %71 = vector.broadcast %70 : vector<1x128xf32> to vector<128x128xf32>
    %72 = arith.addf %67, %71 : vector<128x128xf32>
    %cst_45 = arith.constant 0.000000e+00 : f32
    %73 = vector.broadcast %cst_45 : f32 to vector<128x128xf32>
    %74 = arith.maximumf %72, %73 : vector<128x128xf32>
    %c4_i32 = arith.constant 4 : i32
    %75 = vector.shape_cast %74 : vector<128x128xf32> to vector<2x64x128xf32>
    %cst_46 = arith.constant dense<0.000000e+00> : vector<2x128xf32>
    %76 = vector.multi_reduction <add>, %75, %cst_46 [1] : vector<2x64x128xf32> to vector<2x128xf32>
    %cst_47 = arith.constant 1.562500e-02 : f32
    %77 = vector.broadcast %cst_47 : f32 to vector<2x128xf32>
    %78 = arith.mulf %76, %77 : vector<2x128xf32>
    %79 = arith.truncf %78 : vector<2x128xf32> to vector<2x128xbf16>
    %c0_48 = arith.constant 0 : index
    %c0_49 = arith.constant 0 : index
    %80 = vector.load %arg7[%c0_48, %c0_49] : memref<128x128xbf16, #tpu.memory_space<vmem>>, vector<128x128xbf16>
    %cst_50 = arith.constant dense<0.000000e+00> : vector<2x128xf32>
    %81 = tpu.matmul %79, %80, %cst_50 {dimension_numbers = #tpu.dot_dimension_numbers<[1], [0], [0], [1], [0, 0, 1, 1], [], []>} : vector<2x128xbf16>, vector<128x128xbf16>, vector<2x128xf32> -> vector<2x128xf32>
    %c0_51 = arith.constant 0 : index
    %c0_52 = arith.constant 0 : index
    %82 = vector.load %arg8[%c0_51, %c0_52] : memref<1x128xf32, #tpu.memory_space<vmem>>, vector<1x128xf32>
    %83 = vector.broadcast %82 : vector<1x128xf32> to vector<2x128xf32>
    %84 = arith.addf %81, %83 : vector<2x128xf32>
    %c0_53 = arith.constant 0 : index
    %c0_54 = arith.constant 0 : index
    %c0_55 = arith.constant 0 : index
    %85 = vector.load %arg9[%c0_53, %c0_54, %c0_55] : memref<1x2x128xf32, #tpu.memory_space<vmem>>, vector<1x2x128xf32>
    %86 = vector.shape_cast %85 : vector<1x2x128xf32> to vector<2x128xf32>
    %87 = vector.shape_cast %84 : vector<2x128xf32> to vector<1x2x128xf32>
    tpu.vector_store %arg9[%c0_53, %c0_54, %c0_55], %87 {strides = array<i32>} : memref<1x2x128xf32, #tpu.memory_space<vmem>>, vector<1x2x128xf32>,
    return
  }
  func.func @transform_0(%arg0: i32) -> (i32, i32, i32) {
    %c0_i32 = arith.constant 0 : i32
    %c0_i32_0 = arith.constant 0 : i32
    %c0_i32_1 = arith.constant 0 : i32
    return %arg0, %c0_i32, %c0_i32_0 : i32, i32, i32
  }
  func.func @transform_1(%arg0: i32) -> (i32, i32, i32) {
    %c0_i32 = arith.constant 0 : i32
    %c0_i32_0 = arith.constant 0 : i32
    %c0_i32_1 = arith.constant 0 : i32
    return %arg0, %c0_i32, %c0_i32_0 : i32, i32, i32
  }
  func.func @transform_2(%arg0: i32) -> (i32, i32) {
    %c0_i32 = arith.constant 0 : i32
    %c0_i32_0 = arith.constant 0 : i32
    %c0_i32_1 = arith.constant 0 : i32
    return %c0_i32, %c0_i32_0 : i32, i32
  }
  func.func @transform_3(%arg0: i32) -> (i32, i32) {
    %c0_i32 = arith.constant 0 : i32
    %c0_i32_0 = arith.constant 0 : i32
    %c0_i32_1 = arith.constant 0 : i32
    return %c0_i32, %c0_i32_0 : i32, i32
  }
  func.func @transform_4(%arg0: i32) -> (i32, i32, i32) {
    %c0_i32 = arith.constant 0 : i32
    %c0_i32_0 = arith.constant 0 : i32
    %c0_i32_1 = arith.constant 0 : i32
    %c0_i32_2 = arith.constant 0 : i32
    return %c0_i32, %c0_i32_0, %c0_i32_1 : i32, i32, i32
  }
  func.func @transform_5(%arg0: i32) -> (i32, i32, i32) {
    %c0_i32 = arith.constant 0 : i32
    %c0_i32_0 = arith.constant 0 : i32
    %c0_i32_1 = arith.constant 0 : i32
    %c0_i32_2 = arith.constant 0 : i32
    return %c0_i32, %c0_i32_0, %c0_i32_1 : i32, i32, i32
  }
  func.func @transform_6(%arg0: i32) -> (i32, i32) {
    %c0_i32 = arith.constant 0 : i32
    %c0_i32_0 = arith.constant 0 : i32
    %c0_i32_1 = arith.constant 0 : i32
    return %c0_i32, %c0_i32_0 : i32, i32
  }
  func.func @transform_7(%arg0: i32) -> (i32, i32) {
    %c0_i32 = arith.constant 0 : i32
    %c0_i32_0 = arith.constant 0 : i32
    %c0_i32_1 = arith.constant 0 : i32
    return %c0_i32, %c0_i32_0 : i32, i32
  }
  func.func @transform_8(%arg0: i32) -> (i32, i32, i32) {
    %c0_i32 = arith.constant 0 : i32
    %c0_i32_0 = arith.constant 0 : i32
    %c0_i32_1 = arith.constant 0 : i32
    return %arg0, %c0_i32, %c0_i32_0 : i32, i32, i32
  }
}

</mosaic_0001>

<bundles_post_ra>
// kernel: tpu_custom_call.1
= control target key start
LH: loop header
LB: loop body
LE: loop exit
PB: predicated region body
PF: predicated region fallthrough
CT: control target
= control target key end

     0   :  { %s4053_s0 = inlined_call_operand.hbm [shape: bf16[4,64,128], index: 0, kind: input, shape index: {}]   ;;  %s4054_s1 = inlined_call_operand.hbm [shape: bf16[4,64,64], index: 1, kind: input, shape index: {}]   ;;  %s4055_s2 = inlined_call_operand.hbm [shape: bf16[128,128], index: 2, kind: input, shape index: {}]   ;;  %s4056_s3 = inlined_call_operand.vmem [shape: f32[1,128], index: 3, kind: input, shape index: {}]   ;;  %s4057_s4 = inlined_call_operand.hbm [shape: bf16[4,128,128], index: 4, kind: input, shape index: {}]   ;;  %s4058_s5 = inlined_call_operand.vmem [shape: f32[4,1,128], index: 5, kind: input, shape index: {}]   ;;  %s4059_s6 = inlined_call_operand.hbm [shape: bf16[128,128], index: 6, kind: input, shape index: {}]   ;;  %s4060_s7 = inlined_call_operand.vmem [shape: f32[1,128], index: 7, kind: input, shape index: {}]   ;;  %s4061_s8 = inlined_call_operand.hbm [shape: f32[2,2,128], index: 8, kind: output, shape index: {}]  }
   0x1   :  { %4072 = sst [smem:[#allocation20_spill]] %s4053_s0 }
   0x2   :  { %4073 = sst [smem:[#allocation21_spill]] %s4055_s2 }
   0x3   :  { %4074 = sst [smem:[#allocation22_spill]] %s4057_s4 }
   0x4   :  { %4075 = sst [smem:[#allocation23_spill]] %s4059_s6 }
   0x5   :  { %13 = vsyncpa [#allocation3], 0 }
   0x6   :  { %15 = vsyncpa [#allocation3 + $0x1], 0 }
   0x7   :  { %16 = vsyncpa [#allocation6], 0 }
   0x8   :  { %18 = vsyncpa [#allocation6 + $0x1], 0 }
   0x9   :  { %19 = vsyncpa [#allocation9], 0 }
   0xa   :  { %20 = vsyncpa [#allocation4], 0 }
   0xb   :  { %22 = vsyncpa [#allocation4 + $0x1], 0  ;;  %s3700_s27 = smov 0   ;;  %s3702_s28 = smov 0  }
   0xc   :  { %s3704_s29 = smov 0   ;;  %s3706_s30 = smov 0  }
   0xd LB: > { %4076 = sst [smem:[#allocation17_spill]] %s3639_s29  ;;  %s3721_s9 = sadd.s32 4294967295, %s3643_s30   ;;  %s3643_s30 = sphi %s3706_s30, %s4099_s30   ;;  %s3639_s29 = sphi %s3704_s29, %s4101_s29   ;;  %s3635_s28 = sphi %s3702_s28, %s4103_s28   ;;  %s3631_s27 = sphi %s3700_s27, %s4102_s27  }
   0xe   : > { %s2640_s10 = sadd.s32 4294967294, %s3643_s30   ;;  %p48_p0 = scmp.ne.s32.totalorder %s3635_s28, %s3631_s27 }
   0xf   : > { %p4062_p1 = scmp.eq.s32.totalorder %s3721_s9, 0  ;;  %p224_p2 = scmp.eq.s32.totalorder %s3721_s9, 1 }
  0x10   : > { %p230_p3 = scmp.eq.s32.totalorder %s2640_s10, 1  ;;  %p2641_p5 = scmp.ge.s32.totalorder %s3643_s30, 1 }
  0x11   : > { %p3730_p4 = por %p4062_p1, %p48_p0  ;;  %p237_p7 = scmp.lt.s32.totalorder %s3643_s30, 3 }
  0x12   : > { %p3735_p6 = por %p230_p3, %p48_p0  ;;  %s3645_s14 = smov [#allocation7]  }
  0x13   : > { %s4077_s11 = scalar_select %p3730_p4, 1, 0 }
  0x14   : > { %s4078_s12 = scalar_select %p3735_p6, 1, 0 }
  0x15   : > { %p3740_p8 = pnand %p2641_p5, %p237_p7  ;;  %s249_s15 = sshll.u32 %s3645_s14, 4  ;;  %s250_s15 = int_to_ptr.vmem [resolvable:$true] %s249_s15 }
  0x16   : > { %s3646_s17 = smov [#allocation8]   ;;  %s3647_s19 = smov [#allocation10]  }
  0x17   : > { %p3277_p9 = pneg %p3740_p8  ;;  %s265_s18 = sshll.u32 %s3646_s17, 4  ;;  %s266_s18 = int_to_ptr.vmem [resolvable:$true] %s265_s18 }
  0x18   : > { %s281_s20 = sshll.u32 %s3647_s19, 4  ;;  %s3444_s21 = scalar_lea.vmem %s250_s15, 1024  ;;  %s282_s20 = int_to_ptr.vmem [resolvable:$true] %s281_s20 }
  0x19   : > { %p3749_p11 = pnand %p3277_p9, %p4062_p1  ;;  %p3445_p13 = scmp.ne.s32.totalorder %s250_s15, %s3444_s21 }
  0x1a   : > { %p3452_p5 = scmp.lt.s32.totalorder %s250_s15, %s250_s15  ;;  %p3453_p7 = scmp.lt.s32.totalorder %s3444_s21, %s3444_s21 }
  0x1b   : > { %p3435_p12 = pneg %p3749_p11 }
  0x1c   : > { %p3454_p9 = por %p3453_p7, %p3452_p5 }
  0x1d   : > { %p3447_p0 = pnand %p3445_p13, %p3435_p12 }
  0x1f   : > { %p3448_p3 = pneg %p3447_p0 }
  0x21   : > { %p3455_p10 = pnand %p3454_p9, %p3448_p3 }
  0x23   : > { %3458 = shalt.err (!%p3455_p10)
}
  0x24   : > { %s4063_s22 = smov 64   ;;  %s4065_s23 = smov 4  }
  0x25   : > { %s4081_s2 = sld [smem:[#allocation21_spill]]  ;;  %s3470_s26 = scalar_lea.vmem %s266_s18, 4096 }
  0x26   : > { %p3471_p13 = scmp.ne.s32.totalorder %s266_s18, %s3470_s26  ;;  %p3478_p3 = scmp.lt.s32.totalorder %s266_s18, %s266_s18 }
  0x27   : > { %p3479_p10 = scmp.lt.s32.totalorder %s3470_s26, %s3470_s26 }
  0x28   : > { %p3473_p0 = pnand %p3471_p13, %p3435_p12 }
  0x29   : > { %p3480_p7 = por %p3479_p10, %p3478_p3 }
  0x2a   : > { %p3474_p5 = pneg %p3473_p0 }
  0x2b   : > { %3280 = dma.hbm_to_vmem [thread:$0]  (!%p3749_p11), %s4081_s2, 1024, %s250_s15, [#allocation6], %s4063_s22, %s4063_s22, %s4065_s23  }
  0x2c   : > { %p3481_p9 = pnand %p3480_p7, %p3474_p5 }
  0x2e   : > { %3484 = shalt.err (!%p3481_p9)
}
  0x2f   : > { %s4082_s4 = sld [smem:[#allocation22_spill]]  ;;  %s3496_s15 = scalar_lea.vmem %s282_s20, 1024 }
  0x30   : > { %p3497_p1 = scmp.ne.s32.totalorder %s282_s20, %s3496_s15  ;;  %p3504_p3 = scmp.lt.s32.totalorder %s282_s20, %s282_s20 }
  0x31   : > { %p3505_p5 = scmp.lt.s32.totalorder %s3496_s15, %s3496_s15 }
  0x32   : > { %p3499_p13 = pnand %p3497_p1, %p3435_p12 }
  0x33   : > { %p3506_p10 = por %p3505_p5, %p3504_p3 }
  0x34   : > { %p3500_p0 = pneg %p3499_p13 }
  0x35   : > { %3283 = dma.hbm_to_vmem [thread:$0]  (!%p3749_p11), %s4082_s4, 4096, %s266_s18, [#allocation9], %s4063_s22, %s4063_s22, %s4065_s23  }
  0x36   : > { %p3507_p7 = pnand %p3506_p10, %p3500_p0 }
  0x38   : > { %3510 = shalt.err (!%p3507_p7)
}
  0x39   : > { %s4083_s6 = sld [smem:[#allocation23_spill]]  ;;  %s3789_s18 = sadd.s32 1, %s3643_s30  }
  0x3a   : > { %4084 = sst [smem:[#allocation18_spill]] %s3789_s18  ;;  %s32_s16 = ssub.s32 %s3643_s30, %s3789_s18 }
  0x3b   : > { %s35_s21 = sadd.s32 1, %s3639_s29  ;;  %p33_p1 = scmp.eq.s32.totalorder %s32_s16, 0 }
  0x3c   : > { %p42_p12 = scmp.ne.s32.totalorder %s3639_s29, %s3635_s28  ;;  %p43_p9 = scmp.eq.s32.totalorder %s3643_s30, 0 }
  0x3d   : > { %p3301_p13 = scmp.lt.s32.totalorder %s3643_s30, 2  ;;  %s298_s26 = sand.u32 1, %s3639_s29  }
  0x3e   : > { %s3799_s24 = scalar_select %p33_p1, %s3639_s29, %s35_s21  }
  0x3f   : > { %3286 = dma.hbm_to_vmem [thread:$0]  (!%p3749_p11), %s4083_s6, 1024, %s282_s20, [#allocation9], %s4063_s22, %s4063_s22, %s4065_s23  }
  0x40   : > { %4085 = sst [smem:[#allocation19_spill]] %s3799_s24  ;;  %p44_p0 = por %p43_p9, %p42_p12 }
  0x41   : > { %p3803_p3 = por %p224_p2, %p42_p12  ;;  %s2795_s10 = sshll.u32 %s3643_s30, 10 }
  0x42   : > { %s3809_s20 = sshll.u32 %s298_s26, 6  ;;  %s4087_s0 = sld [smem:[#allocation20_spill]] }
  0x43   : > { %s4086_s25 = scalar_select %p3803_p3, 1, 0 }
  0x44   : > { %s302_s19 = scalar_lea.vmem [#allocation2], %s3809_s20  ;;  %p3817_p11 = pnand %p3301_p13, %p44_p0 }
  0x45   : > { %s310_s16 = sshll.u32 %s302_s19, 4  ;;  %s3826_s14 = scalar_lea.hbm %s4054_s1, %s2795_s10  ;;  %s3821_s16 = int_to_ptr.vmem [resolvable:$true] %s310_s16 }
  0x46   : > { %s3828_s15 = scalar_lea.sflag [#allocation3], %s298_s26  ;;  %p3513_p5 = pneg %p3817_p11 }
  0x48   : > { %s3814_s17 = scalar_lea.hbm %s4087_s0, %s2795_s10  ;;  %s3516_s6 = scalar_lea.hbm %s4087_s0, 2048 }
  0x49   : > { %s3511_s2 = scalar_lea.hbm %s3814_s17, 1024  ;;  %p3517_p1 = scmp.lt.s32.totalorder %s3814_s17, %s4087_s0 }
  0x4a   : > { %p3512_p2 = scmp.ne.s32.totalorder %s3814_s17, %s3511_s2  ;;  %p3518_p12 = scmp.lt.s32.totalorder %s3516_s6, %s3511_s2 }
  0x4c   : > { %p3514_p10 = pnand %p3513_p5, %p3512_p2  ;;  %p3519_p9 = por %p3518_p12, %p3517_p1 }
  0x4e   : > { %p3515_p7 = pneg %p3514_p10 }
  0x50   : > { %p3520_p13 = pnand %p3519_p9, %p3515_p7 }
  0x52   : > { %3523 = shalt.err (!%p3520_p13)
}
  0x53   : > { %s3524_s22 = scalar_lea.vmem %s3821_s16, 1024  ;;  %s3650_s4 = smov [#allocation2]  }
  0x54   : > { %p3525_p0 = scmp.ne.s32.totalorder %s3821_s16, %s3524_s22  ;;  %s3529_s23 = sshll.u32 %s3650_s4, 4  ;;  %s3530_s23 = int_to_ptr.vmem [resolvable:$false] %s3529_s23 }
  0x55   : > { %s3531_s26 = scalar_lea.vmem %s3530_s23, 2048  ;;  %p3532_p6 = scmp.lt.s32.totalorder %s3821_s16, %s3530_s23 }
  0x56   : > { %p3527_p2 = pnand %p3525_p0, %p3513_p5  ;;  %p3533_p3 = scmp.lt.s32.totalorder %s3531_s26, %s3524_s22 }
  0x58   : > { %p3528_p10 = pneg %p3527_p2  ;;  %p3534_p4 = por %p3533_p3, %p3532_p6 }
  0x5a   : > { %p3535_p1 = pnand %p3534_p4, %p3528_p10 }
  0x5c   : > { %3538 = shalt.err (!%p3535_p1)
}
  0x5d   : > { %s4089_s2 = smov 4   ;;  %s4090_s6 = smov 64  }
  0x5e   : > { %3290 = dma.hbm_to_vmem [thread:$0]  (!%p3817_p11), %s3814_s17, 1024, %s3821_s16, %s3828_s15, %s4090_s6, %s4090_s6, %s4089_s2  }
  0x5f   : > { %s324_s29 = scalar_lea.vmem [#allocation5], %s3809_s20  ;;  %s320_s10 = sand.u32 1, %s3643_s30  }
  0x60   : > { %s332_s24 = sshll.u32 %s324_s29, 4  ;;  %s321_s19 = scalar_lea.sflag [#allocation6], %s320_s10  ;;  %s3860_s24 = int_to_ptr.vmem [resolvable:$true] %s332_s24 }
  0x61   : > { %s3539_s22 = scalar_lea.hbm %s3826_s14, 1024  ;;  %s3544_s26 = scalar_lea.hbm %s4054_s1, 2048 }
  0x62   : > { %p3540_p4 = scmp.ne.s32.totalorder %s3826_s14, %s3539_s22  ;;  %p3545_p7 = scmp.lt.s32.totalorder %s3826_s14, %s4054_s1 }
  0x63   : > { %p3546_p12 = scmp.lt.s32.totalorder %s3544_s26, %s3539_s22 }
  0x64   : > { %p3542_p6 = pnand %p3540_p4, %p3513_p5 }
  0x65   : > { %p3547_p9 = por %p3546_p12, %p3545_p7 }
  0x66   : > { %p3543_p3 = pneg %p3542_p6 }
  0x68   : > { %p3548_p13 = pnand %p3547_p9, %p3543_p3 }
  0x6a   : > { %3551 = shalt.err (!%p3548_p13)
}
  0x6b   : > { %s3552_s20 = scalar_lea.vmem %s3860_s24, 1024  ;;  %s3651_s17 = smov [#allocation5]  }
  0x6c   : > { %p3553_p0 = scmp.ne.s32.totalorder %s3860_s24, %s3552_s20  ;;  %s3557_s16 = sshll.u32 %s3651_s17, 4  ;;  %s3558_s16 = int_to_ptr.vmem [resolvable:$false] %s3557_s16 }
  0x6d   : > { %s3559_s15 = scalar_lea.vmem %s3558_s16, 2048  ;;  %p3560_p1 = scmp.lt.s32.totalorder %s3860_s24, %s3558_s16 }
  0x6e   : > { %p3555_p2 = pnand %p3553_p0, %p3513_p5  ;;  %p3561_p4 = scmp.lt.s32.totalorder %s3559_s15, %s3552_s20 }
  0x70   : > { %p3556_p10 = pneg %p3555_p2  ;;  %p3562_p6 = por %p3561_p4, %p3560_p1 }
  0x72   : > { %p3563_p7 = pnand %p3562_p6, %p3556_p10 }
  0x74   : > { %3566 = shalt.err (!%p3563_p7)
}
  0x75   : > { %3293 = dma.hbm_to_vmem [thread:$0]  (!%p3817_p11), %s3826_s14, 1024, %s3860_s24, %s321_s19, %s4090_s6, %s4090_s6, %s4089_s2  }
  0x76   : > { %344 = sbr.rel (%p3740_p8) target bundleno = 2343 (0x927), region = 52  ;;  %s3890_s0 = sand.u32 (!%p3740_p8), 1, %s3635_s28  }
  0x77   : > { %s2655_s18 = sshll.u32 (!%p3740_p8), %s3890_s0, 6  ;;  %s347_s29 = scalar_lea.sflag (!%p3740_p8), [#allocation3], %s3890_s0 }
  0x78   : > { %s3894_s10 = scalar_lea.vmem (!%p3740_p8), [#allocation2], %s2655_s18  ;;  %p4091_p5 = scmp.ne.s32.totalorder (!%p3740_p8), %s4077_s11, 0 }
  0x7b   : > { %3610 = dma.done.wait (%p4091_p5), %s347_s29, 1024  }
  0x7c   : > { %3612 = vsyncadd (%p4091_p5), %s347_s29, 4294966272  ;;  %s355_s21 = sand.u32 1, %s3721_s9   ;;  %s3901_s14 = scalar_lea.vmem [#allocation5], %s2655_s18 }
  0x7d   : > { %s356_s13 = scalar_lea.sflag [#allocation6], %s355_s21 }
  0x7e   : > { %3614 = dma.done.wait (%p4091_p5), %s356_s13, 1024  }
  0x7f   : > { %3616 = vsyncadd (%p4091_p5), %s356_s13, 4294966272  ;;  %p4092_p8 = scmp.eq.s32.totalorder %s3721_s9, 0 }
  0x81   : > { %3618 = dma.done.wait (%p4092_p8), [#allocation6], 1024   ;;  %p4093_p11 = pmov %p4092_p8 }
  0x82   : > { %p4094_p3 = pmov %p4092_p8 }
  0x83   : > { %3620 = vsyncadd (%p4093_p11), [#allocation6], 4294966272 }
  0x84   : > { %3622 = dma.done.wait (%p4094_p3), [#allocation9], 5120   ;;  %p4095_p12 = pmov %p4094_p3 }
  0x85   : > { %v3345_v0 = vld [vmem:[#allocation7 + $0x38] sm:$0xff]   ;;  %v3346_v1 = vld [vmem:[#allocation7 + $0x30] sm:$0xff]   ;;  %v3347_v2 = vld [vmem:[#allocation7 + $0x28] sm:$0xff]   ;;  %vm857_vm0 = vcmask 523264   ;;  %vm3653_vm1 = vmmov 0   ;;  %vm2412_vm2 = vcmask 1041409  }
  0x86   : > { %3624 = vsyncadd (%p4095_p12), [#allocation9], 4294962176  ;;  %2951 = vmatprep.subr.bf16.mxu0 %v3345_v0  ;;  %v3348_v3 = vld [vmem:[#allocation7 + $0x20] sm:$0xff]   ;;  %v3349_v5 = vld [vmem:[#allocation7 + $0x18] sm:$0xff]   ;;  %s2660_s17 = sshll.u32 %s3890_s0, 1  ;;  %s2791_s18 = sshll.u32 %s3721_s9, 5 }
  0x87   : > { %2952 = vmatpush3.bf16.msra.mxu0 %v3345_v0  ;;  %v3353_v4 = vld [vmem:[%s3894_s10] sm:$0xff]   ;;  %v3350_v6 = vld [vmem:[#allocation7 + $0x10] sm:$0xff]   ;;  %v3361_v7 = vld [vmem:[#allocation8 + $0x38] sm:$0xff]   ;;  %s408_s29 = scalar_lea.vmem [#allocation11], %s2660_s17  ;;  %s2506_s11 = scalar_lea.sflag [#allocation4], %s3890_s0 }
  0x88   : > { %2953 = vmatprep.subr.bf16.mxu0 %v3346_v1  ;;  %2967 = vmatprep.mubr.bf16.mxu0 %v3353_v4  ;;  %v3362_v8 = vld [vmem:[#allocation8 + $0x30] sm:$0xff]   ;;  %v3351_v9 = vld [vmem:[#allocation7 + $0x8] sm:$0xff]   ;;  %v3352_v11 = vld [vmem:[#allocation7] sm:$0xff]   ;;  %p4096_p13 = scmp.ne.s32.totalorder %s4086_s25, 0  ;;  %s3654_s9 = smov [#allocation11]  }
  0x89   : > { %2983 = vmatprep.subr.bf16.mxu1 %v3361_v7  ;;  %v3363_v10 = vld [vmem:[#allocation8 + $0x28] sm:$0xff]   ;;  %v3364_v12 = vld [vmem:[#allocation8 + $0x20] sm:$0xff]   ;;  %v3365_v13 = vld [vmem:[#allocation8 + $0x18] sm:$0xff]   ;;  %s3571_s6 = sshll.u32 %s3654_s9, 4  ;;  %s3572_s6 = int_to_ptr.vmem [resolvable:$false] %s3571_s6 }
  0x8a   : > { %2984 = vmatpush3.bf16.msra.mxu1 %v3361_v7  ;;  %v3354_v14 = vld [vmem:[%s3894_s10 + $0x8] sm:$0xff]   ;;  %v3355_v15 = vld [vmem:[%s3894_s10 + $0x10] sm:$0xff]   ;;  %v3356_v16 = vld [vmem:[%s3894_s10 + $0x18] sm:$0xff]   ;;  %s3573_s24 = scalar_lea.vmem %s3572_s6, 64 }
  0x8b   : > { %2954 = vmatpush3.bf16.msra.mxu0 %v3346_v1  ;;  %2985 = vmatprep.subr.bf16.mxu1 %v3362_v8  ;;  %v3357_v17 = vld [vmem:[%s3894_s10 + $0x20] sm:$0xff]   ;;  %v3358_v18 = vld [vmem:[%s3894_s10 + $0x28] sm:$0xff]   ;;  %v3359_v19 = vld [vmem:[%s3894_s10 + $0x30] sm:$0xff]  }
  0x8c   : > { %2955 = vmatprep.subr.bf16.mxu0 %v3347_v2  ;;  %v3360_v20 = vld [vmem:[%s3894_s10 + $0x38] sm:$0xff]   ;;  %v3366_v21 = vld [vmem:[#allocation8 + $0x10] sm:$0xff]   ;;  %v3367_v22 = vld [vmem:[#allocation8 + $0x8] sm:$0xff]   ;;  %s2519_s10 = sshll.u32 %s408_s29, 4  ;;  %s4012_s10 = int_to_ptr.vmem [resolvable:$true] %s2519_s10 }
  0x8d   : > { %v3368_v23 = vld [vmem:[#allocation8] sm:$0xff]   ;;  %v3379_v4 = vld [vmem:[#allocation8 + $0x68] sm:$0xff]   ;;  %s3567_s2 = scalar_lea.vmem %s4012_s10, 32  ;;  %p3574_p10 = scmp.lt.s32.totalorder %s4012_s10, %s3572_s6 }
  0x8e   : > { %2986 = vmatpush3.bf16.msra.mxu1 %v3362_v8  ;;  %v2661_v27 = vld [vmem:[%s4056_s3] ss:$0 sm:$0xff]  ;;  %p3568_p9 = scmp.ne.s32.totalorder %s4012_s10, %s3567_s2  ;;  %p3575_p1 = scmp.lt.s32.totalorder %s3573_s24, %s3567_s2 }
  0x8f   : > { %2956 = vmatpush3.bf16.msra.mxu0 %v3347_v2  ;;  %2987 = vmatprep.subr.bf16.mxu1 %v3363_v10  ;;  %v3369_v1 = vld [vmem:[%s3901_s14] sm:$0xff]   ;;  %v3377_v2 = vld [vmem:[#allocation8 + $0x78] sm:$0xff]  }
  0x90   : > { %2957 = vmatprep.subr.bf16.mxu0 %v3348_v3  ;;  %p3569_p0 = pnand %p3568_p9, %p4096_p13  ;;  %p3576_p4 = por %p3575_p1, %p3574_p10 }
  0x92   : > { %2988 = vmatpush3.bf16.msra.mxu1 %v3363_v10  ;;  %p3570_p2 = pneg %p3569_p0 }
  0x93   : > { %2958 = vmatpush3.bf16.msra.mxu0 %v3348_v3  ;;  %2989 = vmatprep.subr.bf16.mxu1 %v3364_v12  ;;  %v3378_v3 = vld [vmem:[#allocation8 + $0x70] sm:$0xff]  }
  0x94   : > { %2959 = vmatprep.subr.bf16.mxu0 %v3349_v5  ;;  %p3577_p6 = pnand %p3576_p4, %p3570_p2 }
  0x96   : > { %2990 = vmatpush3.bf16.msra.mxu1 %v3364_v12 }
  0x97   : > { %2960 = vmatpush3.bf16.msra.mxu0 %v3349_v5  ;;  %2991 = vmatprep.subr.bf16.mxu1 %v3365_v13  ;;  %v3380_v5 = vld [vmem:[#allocation8 + $0x60] sm:$0xff]  }
  0x98   : > { %2961 = vmatprep.subr.bf16.mxu0 %v3350_v6 }
  0x9a   : > { %2992 = vmatpush3.bf16.msra.mxu1 %v3365_v13 }
  0x9b   : > { %2962 = vmatpush3.bf16.msra.mxu0 %v3350_v6  ;;  %2993 = vmatprep.subr.bf16.mxu1 %v3366_v21  ;;  %v3381_v6 = vld [vmem:[#allocation8 + $0x58] sm:$0xff]  }
  0x9c   : > { %2963 = vmatprep.subr.bf16.mxu0 %v3351_v9 }
  0x9e   : > { %2994 = vmatpush3.bf16.msra.mxu1 %v3366_v21 }
  0x9f   : > { %2964 = vmatpush3.bf16.msra.mxu0 %v3351_v9  ;;  %2995 = vmatprep.subr.bf16.mxu1 %v3367_v22 }
  0xa0   : > { %2965 = vmatprep.subr.bf16.mxu0 %v3352_v11 }
  0xa2   : > { %2996 = vmatpush3.bf16.msra.mxu1 %v3367_v22 }
  0xa3   : > { %2966 = vmatpush3.bf16.msra.mxu0 %v3352_v11  ;;  %2997 = vmatprep.subr.bf16.mxu1 %v3368_v23 }
  0xa4   : > { %3047 = vmatprep.subr.bf16.mxu0 %v3377_v2 }
  0xa6   : > { %2968 = vmatmul.mubr.bf16.vlgmr.msra.gmra.mxu0 %v3354_v14  ;;  %2998 = vmatpush3.bf16.msra.mxu1 %v3368_v23 }
  0xa7   : > { %2971 = vmatprep.mubr.bf16.mxu0 %v3355_v15  ;;  %3048 = vmatpush3.bf16.msra.mxu0 %v3377_v2 }
  0xa8   : > { %3049 = vmatprep.subr.bf16.mxu0 %v3378_v3 }
  0xab   : > { %3050 = vmatpush3.bf16.msra.mxu0 %v3378_v3 }
  0xac   : > { %3051 = vmatprep.subr.bf16.mxu0 %v3379_v4 }
  0xae   : > { %2972 = vmatmul.mubr.bf16.gmra.mxu0 %v3356_v16 }
  0xaf   : > { %2975 = vmatprep.mubr.bf16.mxu0 %v3357_v17  ;;  %3052 = vmatpush3.bf16.msra.mxu0 %v3379_v4 }
  0xb0   : > { %3053 = vmatprep.subr.bf16.mxu0 %v3380_v5 }
  0xb3   : > { %3054 = vmatpush3.bf16.msra.mxu0 %v3380_v5 }
  0xb4   : > { %3055 = vmatprep.subr.bf16.mxu0 %v3381_v6 }
  0xb6   : > { %2976 = vmatmul.mubr.bf16.gmra.mxu0 %v3358_v18 }
  0xb7   : > { %2979 = vmatprep.mubr.bf16.mxu0 %v3359_v19  ;;  %3056 = vmatpush3.bf16.msra.mxu0 %v3381_v6 }
  0xbe   : > { %2980 = vmatmul.mubr.bf16.gmra.mxu0 %v3360_v20 }
 0x166   : > { %v2969_v24 = vpop.f32.mrf.mxu0 }
 0x167   : > { %v590_v32 = vadd.f32 %v2969_v24, %v2661_v27 }
 0x168   : > { %v581_v25 = vpop.f32.mrf.mxu0 }
 0x169   : > { %v582_v30 = vadd.f32 %v2661_v27, %v581_v25  ;;  %v3370_v25 = vld [vmem:[%s3901_s14 + $0x8] sm:$0xff]  }
 0x16a   : > { %v2970_v26 = vpop.f32.mrf.mxu0 }
 0x16b   : > { %v593_v28 = vadd.f32 %v2970_v26, %v2661_v27 }
 0x16c   : > { %v584_v29 = vpop.f32.mrf.mxu0 }
 0x16d   : > { %v585_v31 = vadd.f32 %v2661_v27, %v584_v29  ;;  %v645_v35 = vpack.c.bf16 %v593_v28, %v590_v32  ;;  %v3372_v32 = vld [vmem:[%s3901_s14 + $0x18] sm:$0xff]  }
 0x16e   : > { %v2973_v33 = vpop.f32.mrf.mxu0 }
 0x16f   : > { %v644_v34 = vpack.c.bf16 %v585_v31, %v582_v30  ;;  %v606_v42 = vadd.f32 %v2973_v33, %v2661_v27  ;;  %v3373_v33 = vld [vmem:[%s3901_s14 + $0x20] sm:$0xff]  }
 0x170   : > { %v597_v36 = vpop.f32.mrf.mxu0 }
 0x171   : > { %2999 = vmatprep.mubr.bf16.mxu1 %v644_v34  ;;  %v598_v40 = vadd.f32 %v2661_v27, %v597_v36  ;;  %v3375_v36 = vld [vmem:[%s3901_s14 + $0x30] sm:$0xff]  }
 0x172   : > { %v2974_v37 = vpop.f32.mrf.mxu0  ;;  %3000 = vmatmul.mubr.bf16.vlgmr.msra.gmra.mxu1 %v645_v35  ;;  %v3374_v35 = vld [vmem:[%s3901_s14 + $0x28] sm:$0xff]  }
 0x173   : > { %v609_v38 = vadd.f32 %v2974_v37, %v2661_v27  ;;  %v3376_v37 = vld [vmem:[%s3901_s14 + $0x38] sm:$0xff]  }
 0x174   : > { %v600_v39 = vpop.f32.mrf.mxu0 }
 0x175   : > { %v601_v41 = vadd.f32 %v2661_v27, %v600_v39  ;;  %v647_v45 = vpack.c.bf16 %v609_v38, %v606_v42  ;;  %v3382_v38 = vld [vmem:[#allocation8 + $0x50] sm:$0xff]   ;;  %v3383_v39 = vld [vmem:[#allocation8 + $0x48] sm:$0xff]  }
 0x176   : > { %v2977_v43 = vpop.f32.mrf.mxu0  ;;  %3057 = vmatprep.subr.bf16.mxu0 %v3382_v38 }
 0x177   : > { %v646_v44 = vpack.c.bf16 %v601_v41, %v598_v40  ;;  %v622_v52 = vadd.f32 %v2977_v43, %v2661_v27  ;;  %3058 = vmatpush3.bf16.msra.mxu0 %v3382_v38  ;;  %v3384_v40 = vld [vmem:[#allocation8 + $0x40] sm:$0xff]  }
 0x178   : > { %v613_v46 = vpop.f32.mrf.mxu0  ;;  %3059 = vmatprep.subr.bf16.mxu0 %v3383_v39  ;;  %v2702_v43 = vld [vmem:[%s4058_s5] ss:$0 sm:$0xff] }
 0x179   : > { %3003 = vmatprep.mubr.bf16.mxu1 %v646_v44  ;;  %v614_v50 = vadd.f32 %v2661_v27, %v613_v46  ;;  %v3396_v38 = vld [vmem:[#allocation8 + $0xa0] sm:$0xff]  }
 0x17a   : > { %v2978_v47 = vpop.f32.mrf.mxu0  ;;  %3004 = vmatmul.mubr.bf16.gmra.mxu1 %v647_v45 }
 0x17b   : > { %v625_v48 = vadd.f32 %v2978_v47, %v2661_v27  ;;  %3060 = vmatpush3.bf16.msra.mxu0 %v3383_v39  ;;  %v3397_v39 = vld [vmem:[#allocation8 + $0x98] sm:$0xff]  }
 0x17c   : > { %v616_v49 = vpop.f32.mrf.mxu0  ;;  %3061 = vmatprep.subr.bf16.mxu0 %v3384_v40 }
 0x17d   : > { %v617_v51 = vadd.f32 %v2661_v27, %v616_v49  ;;  %v649_v55 = vpack.c.bf16 %v625_v48, %v622_v52 }
 0x17e   : > { %v2981_v53 = vpop.f32.mrf.mxu0 }
 0x17f   : > { %v648_v54 = vpack.c.bf16 %v617_v51, %v614_v50  ;;  %v638_v62 = vadd.f32 %v2981_v53, %v2661_v27  ;;  %3062 = vmatpush3.bf16.msra.mxu0 %v3384_v40 }
 0x180   : > { %v629_v56 = vpop.f32.mrf.mxu0 }
 0x181   : > { %3007 = vmatprep.mubr.bf16.mxu1 %v648_v54  ;;  %v630_v60 = vadd.f32 %v2661_v27, %v629_v56 }
 0x182   : > { %v2982_v57 = vpop.f32.mrf.mxu0  ;;  %3008 = vmatmul.mubr.bf16.gmra.mxu1 %v649_v55 }
 0x183   : > { %v641_v58 = vadd.f32 %v2982_v57, %v2661_v27 }
 0x184   : > { %v632_v59 = vpop.f32.mrf.mxu0 }
 0x185   : > { %v633_v61 = vadd.f32 %v2661_v27, %v632_v59  ;;  %v651_v0 = vpack.c.bf16 %v641_v58, %v638_v62  ;;  %v3371_v27 = vld [vmem:[%s3901_s14 + $0x10] sm:$0xff]  }
 0x187   : > { %v650_v63 = vpack.c.bf16 %v633_v61, %v630_v60 }
 0x189   : > { %3011 = vmatprep.mubr.bf16.mxu1 %v650_v63 }
 0x18a   : > { %3012 = vmatmul.mubr.bf16.gmra.mxu1 %v651_v0 }
 0x18b   : > { %3023 = vmatprep.mubr.msk.bf16.mxu1 %vm857_vm0, %v3369_v1 }
 0x232   : > { %v3001_v7 = vpop.f32.mrf.mxu1 }
 0x234   : > { %v750_v8 = vpop.f32.mrf.mxu1 }
 0x236   : > { %v3002_v9 = vpop.f32.mrf.mxu1 }
 0x237   : > { %v814_v19 = vpack.c.bf16 %v3002_v9, %v3001_v7 }
 0x238   : > { %v753_v10 = vpop.f32.mrf.mxu1 }
 0x239   : > { %v813_v22 = vpack.c.bf16 %v753_v10, %v750_v8 }
 0x23a   : > { %v3005_v11 = vpop.f32.mrf.mxu1 }
 0x23c   : > { %v766_v12 = vpop.f32.mrf.mxu1 }
 0x23e   : > { %v3006_v13 = vpop.f32.mrf.mxu1 }
 0x23f   : > { %v816_v14 = vpack.c.bf16 %v3006_v13, %v3005_v11 }
 0x240   : > { %v769_v15 = vpop.f32.mrf.mxu1 }
 0x241   : > { %v815_v16 = vpack.c.bf16 %v769_v15, %v766_v12  ;;  %3015 = vmatprep.subr.bf16.mxu1 %v816_v14 }
 0x242   : > { %v3009_v17 = vpop.f32.mrf.mxu1  ;;  %3016 = vmatpush3.bf16.msra.mxu1 %v816_v14 }
 0x243   : > { %3017 = vmatprep.subr.bf16.mxu1 %v815_v16 }
 0x244   : > { %v782_v18 = vpop.f32.mrf.mxu1 }
 0x246   : > { %v3010_v20 = vpop.f32.mrf.mxu1  ;;  %3018 = vmatpush3.bf16.msra.mxu1 %v815_v16 }
 0x247   : > { %3019 = vmatprep.subr.bf16.mxu1 %v814_v19  ;;  %v818_v31 = vpack.c.bf16 %v3010_v20, %v3009_v17 }
 0x248   : > { %v785_v21 = vpop.f32.mrf.mxu1 }
 0x249   : > { %v817_v34 = vpack.c.bf16 %v785_v21, %v782_v18 }
 0x24a   : > { %v3013_v23 = vpop.f32.mrf.mxu1  ;;  %3020 = vmatpush3.bf16.msra.mxu1 %v814_v19 }
 0x24b   : > { %3021 = vmatprep.subr.bf16.mxu1 %v813_v22 }
 0x24c   : > { %v798_v24 = vpop.f32.mrf.mxu1 }
 0x24e   : > { %v3014_v26 = vpop.f32.mrf.mxu1  ;;  %3022 = vmatpush3.bf16.msra.mxu1 %v813_v22 }
 0x24f   : > { %v820_v28 = vpack.c.bf16 %v3014_v26, %v3013_v23 }
 0x250   : > { %v801_v29 = vpop.f32.mrf.mxu1 }
 0x251   : > { %3024 = vmatmul.mubr.msk.bf16.vlgmr.msra.gmra.mxu1 %vm857_vm0, %v3370_v25  ;;  %3031 = vmatprep.subr.bf16.mxu1 %v820_v28  ;;  %v819_v30 = vpack.c.bf16 %v801_v29, %v798_v24 }
 0x252   : > { %3032 = vmatpush3.bf16.msra.mxu1 %v820_v28  ;;  %3027 = vmatprep.mubr.msk.bf16.mxu1 %vm857_vm0, %v3371_v27 }
 0x253   : > { %3033 = vmatprep.subr.bf16.mxu1 %v819_v30 }
 0x256   : > { %3034 = vmatpush3.bf16.msra.mxu1 %v819_v30 }
 0x257   : > { %3035 = vmatprep.subr.bf16.mxu1 %v818_v31 }
 0x259   : > { %3028 = vmatmul.mubr.msk.bf16.gmra.mxu1 %vm857_vm0, %v3372_v32 }
 0x25a   : > { %3036 = vmatpush3.bf16.msra.mxu1 %v818_v31  ;;  %3039 = vmatprep.mubr.msk.bf16.mxu1 %vm857_vm0, %v3373_v33 }
 0x25b   : > { %3037 = vmatprep.subr.bf16.mxu1 %v817_v34 }
 0x25e   : > { %3038 = vmatpush3.bf16.msra.mxu1 %v817_v34  ;;  %v3385_v34 = vld [vmem:[%s3901_s14] sm:$0xff]  }
 0x261   : > { %3040 = vmatmul.mubr.msk.bf16.vlgmr.msra.gmra.mxu1 %vm857_vm0, %v3374_v35  ;;  %v3393_v35 = vld [vmem:[#allocation8 + $0xb8] sm:$0xff]  }
 0x262   : > { %3043 = vmatprep.mubr.msk.bf16.mxu1 %vm857_vm0, %v3375_v36  ;;  %v3394_v36 = vld [vmem:[#allocation8 + $0xb0] sm:$0xff]   ;;  %3111 = vmatprep.subr.bf16.mxu0 %v3393_v35 }
 0x269   : > { %3044 = vmatmul.mubr.msk.bf16.gmra.mxu1 %vm857_vm0, %v3376_v37  ;;  %v3395_v37 = vld [vmem:[#allocation8 + $0xa8] sm:$0xff]  }
 0x26a   : > { %3087 = vmatprep.mubr.msk.bf16.mxu1 %vm857_vm0, %v3385_v34 }
 0x311   : > { %v3025_v41 = vpop.f32.mrf.mxu1 }
 0x312   : > { %v1041_v47 = vadd.f32 %v3025_v41, %v2702_v43 }
 0x313   : > { %v904_v42 = vpop.f32.mrf.mxu1 }
 0x314   : > { %v1039_v45 = vadd.f32 %v2702_v43, %v904_v42  ;;  %v1057_v54 = vmax.f32 %v1041_v47, 0.0 }
 0x315   : > { %v3026_v44 = vpop.f32.mrf.mxu1 }
 0x316   : > { %v1042_v46 = vadd.f32 %v3026_v44, %v2702_v43  ;;  %v1055_v52 = vmax.f32 %v1039_v45, 0.0 }
 0x317   : > { %v907_v48 = vpop.f32.mrf.mxu1 }
 0x318   : > { %v1040_v49 = vadd.f32 %v2702_v43, %v907_v48  ;;  %v1058_v50 = vmax.f32 %v1042_v46, 0.0 }
 0x319   : > { %v3029_v51 = vpop.f32.mrf.mxu1 }
 0x31a   : > { %v1056_v53 = vmax.f32 %v1040_v49, 0.0  ;;  %v1072_v57 = vpack.c.bf16 %v1058_v50, %v1057_v54  ;;  %v1045_v61 = vadd.f32 %v3029_v51, %v2702_v43 }
 0x31b   : > { %v920_v55 = vpop.f32.mrf.mxu1 }
 0x31c   : > { %v1071_v56 = vpack.c.bf16 %v1056_v53, %v1055_v52  ;;  %v1043_v59 = vadd.f32 %v2702_v43, %v920_v55  ;;  %v1061_v4 = vmax.f32 %v1045_v61, 0.0 }
 0x31d   : > { %v3030_v58 = vpop.f32.mrf.mxu1 }
 0x31e   : > { %v1046_v60 = vadd.f32 %v3030_v58, %v2702_v43  ;;  %3063 = vmatprep.mubr.bf16.mxu0 %v1071_v56  ;;  %v1059_v2 = vmax.f32 %v1043_v59, 0.0  ;;  %v3386_v58 = vld [vmem:[%s3901_s14 + $0x8] sm:$0xff]  }
 0x31f   : > { %v923_v62 = vpop.f32.mrf.mxu1  ;;  %3064 = vmatmul.mubr.bf16.vlgmr.msra.gmra.mxu0 %v1072_v57 }
 0x320   : > { %v1044_v63 = vadd.f32 %v2702_v43, %v923_v62  ;;  %v1062_v0 = vmax.f32 %v1046_v60, 0.0  ;;  %3112 = vmatpush3.bf16.msra.mxu0 %v3393_v35  ;;  %v3387_v60 = vld [vmem:[%s3901_s14 + $0x10] sm:$0xff]  }
 0x321   : > { %v3041_v1 = vpop.f32.mrf.mxu1  ;;  %3113 = vmatprep.subr.bf16.mxu0 %v3394_v36 }
 0x322   : > { %v1060_v3 = vmax.f32 %v1044_v63, 0.0  ;;  %v1074_v7 = vpack.c.bf16 %v1062_v0, %v1061_v4  ;;  %v1049_v11 = vadd.f32 %v3041_v1, %v2702_v43  ;;  %v3388_v1 = vld [vmem:[%s3901_s14 + $0x18] sm:$0xff]   ;;  %v3390_v4 = vld [vmem:[%s3901_s14 + $0x28] sm:$0xff]  }
 0x323   : > { %v1001_v5 = vpop.f32.mrf.mxu1 }
 0x324   : > { %v1073_v6 = vpack.c.bf16 %v1060_v3, %v1059_v2  ;;  %v1047_v9 = vadd.f32 %v2702_v43, %v1001_v5  ;;  %v1065_v18 = vmax.f32 %v1049_v11, 0.0  ;;  %3114 = vmatpush3.bf16.msra.mxu0 %v3394_v36  ;;  %v3389_v2 = vld [vmem:[%s3901_s14 + $0x20] sm:$0xff]   ;;  %v3391_v5 = vld [vmem:[%s3901_s14 + $0x30] sm:$0xff]  }
 0x325   : > { %v3042_v8 = vpop.f32.mrf.mxu1  ;;  %3115 = vmatprep.subr.bf16.mxu0 %v3395_v37 }
 0x326   : > { %v1050_v10 = vadd.f32 %v3042_v8, %v2702_v43  ;;  %3067 = vmatprep.mubr.bf16.mxu0 %v1073_v6  ;;  %v1063_v16 = vmax.f32 %v1047_v9, 0.0  ;;  %v3392_v6 = vld [vmem:[%s3901_s14 + $0x38] sm:$0xff]   ;;  %v3399_v8 = vld [vmem:[#allocation8 + $0x88] sm:$0xff]   ;;  %v3400_v9 = vld [vmem:[#allocation8 + $0x80] sm:$0xff]  }
 0x327   : > { %v1004_v12 = vpop.f32.mrf.mxu1  ;;  %3068 = vmatmul.mubr.bf16.gmra.mxu0 %v1074_v7  ;;  %v3398_v7 = vld [vmem:[#allocation8 + $0x90] sm:$0xff]  }
 0x328   : > { %v1048_v13 = vadd.f32 %v2702_v43, %v1004_v12  ;;  %v1066_v14 = vmax.f32 %v1050_v10, 0.0  ;;  %3116 = vmatpush3.bf16.msra.mxu0 %v3395_v37  ;;  %v2728_v12 = vld [vmem:[%s4058_s5 + $0x1] ss:$0 sm:$0xff] }
 0x329   : > { %v3045_v15 = vpop.f32.mrf.mxu1  ;;  %3117 = vmatprep.subr.bf16.mxu0 %v3396_v38 }
 0x32a   : > { %v1064_v17 = vmax.f32 %v1048_v13, 0.0  ;;  %v1076_v21 = vpack.c.bf16 %v1066_v14, %v1065_v18  ;;  %v1053_v25 = vadd.f32 %v3045_v15, %v2702_v43 }
 0x32b   : > { %v1017_v19 = vpop.f32.mrf.mxu1 }
 0x32c   : > { %v1075_v20 = vpack.c.bf16 %v1064_v17, %v1063_v16  ;;  %v1051_v23 = vadd.f32 %v2702_v43, %v1017_v19  ;;  %v1069_v31 = vmax.f32 %v1053_v25, 0.0  ;;  %3118 = vmatpush3.bf16.msra.mxu0 %v3396_v38 }
 0x32d   : > { %v3046_v22 = vpop.f32.mrf.mxu1  ;;  %3119 = vmatprep.subr.bf16.mxu0 %v3397_v39 }
 0x32e   : > { %v1054_v24 = vadd.f32 %v3046_v22, %v2702_v43  ;;  %3071 = vmatprep.mubr.bf16.mxu0 %v1075_v20  ;;  %v1067_v29 = vmax.f32 %v1051_v23, 0.0 }
 0x32f   : > { %v1020_v26 = vpop.f32.mrf.mxu1  ;;  %3072 = vmatmul.mubr.bf16.gmra.mxu0 %v1076_v21 }
 0x330   : > { %v1052_v27 = vadd.f32 %v2702_v43, %v1020_v26  ;;  %v1070_v28 = vmax.f32 %v1054_v24, 0.0  ;;  %3120 = vmatpush3.bf16.msra.mxu0 %v3397_v39 }
 0x331   : > { %3121 = vmatprep.subr.bf16.mxu0 %v3398_v7 }
 0x332   : > { %v1068_v30 = vmax.f32 %v1052_v27, 0.0  ;;  %v1078_v33 = vpack.c.bf16 %v1070_v28, %v1069_v31 }
 0x334   : > { %v1077_v32 = vpack.c.bf16 %v1068_v30, %v1067_v29  ;;  %3122 = vmatpush3.bf16.msra.mxu0 %v3398_v7  ;;  %v3412_v7 = vld [vmem:[#allocation8 + $0xe0] sm:$0xff]  }
 0x335   : > { %3123 = vmatprep.subr.bf16.mxu0 %v3399_v8 }
 0x336   : > { %3075 = vmatprep.mubr.bf16.mxu0 %v1077_v32 }
 0x337   : > { %3076 = vmatmul.mubr.bf16.gmra.mxu0 %v1078_v33 }
 0x338   : > { %3124 = vmatpush3.bf16.msra.mxu0 %v3399_v8  ;;  %v3413_v8 = vld [vmem:[#allocation8 + $0xd8] sm:$0xff]  }
 0x339   : > { %3125 = vmatprep.subr.bf16.mxu0 %v3400_v9 }
 0x33c   : > { %3126 = vmatpush3.bf16.msra.mxu0 %v3400_v9 }
 0x3df   : > { %v3065_v40 = vpop.f32.mrf.mxu0 }
 0x3e1   : > { %v1178_v41 = vpop.f32.mrf.mxu0 }
 0x3e3   : > { %v3066_v42 = vpop.f32.mrf.mxu0 }
 0x3e4   : > { %v1242_v52 = vpack.c.bf16 %v3066_v42, %v3065_v40 }
 0x3e5   : > { %v1181_v43 = vpop.f32.mrf.mxu0 }
 0x3e6   : > { %v1241_v55 = vpack.c.bf16 %v1181_v43, %v1178_v41 }
 0x3e7   : > { %v3069_v44 = vpop.f32.mrf.mxu0 }
 0x3e9   : > { %v1194_v45 = vpop.f32.mrf.mxu0 }
 0x3eb   : > { %v3070_v46 = vpop.f32.mrf.mxu0 }
 0x3ec   : > { %v1244_v47 = vpack.c.bf16 %v3070_v46, %v3069_v44 }
 0x3ed   : > { %v1197_v48 = vpop.f32.mrf.mxu0 }
 0x3ee   : > { %v1243_v49 = vpack.c.bf16 %v1197_v48, %v1194_v45  ;;  %3079 = vmatprep.subr.bf16.mxu1 %v1244_v47 }
 0x3ef   : > { %v3073_v50 = vpop.f32.mrf.mxu0  ;;  %3080 = vmatpush3.bf16.msra.mxu1 %v1244_v47 }
 0x3f0   : > { %3081 = vmatprep.subr.bf16.mxu1 %v1243_v49 }
 0x3f1   : > { %v1210_v51 = vpop.f32.mrf.mxu0 }
 0x3f3   : > { %v3074_v53 = vpop.f32.mrf.mxu0  ;;  %3082 = vmatpush3.bf16.msra.mxu1 %v1243_v49 }
 0x3f4   : > { %3083 = vmatprep.subr.bf16.mxu1 %v1242_v52  ;;  %v1246_v0 = vpack.c.bf16 %v3074_v53, %v3073_v50 }
 0x3f5   : > { %v1213_v54 = vpop.f32.mrf.mxu0 }
 0x3f6   : > { %v1245_v3 = vpack.c.bf16 %v1213_v54, %v1210_v51 }
 0x3f7   : > { %v3077_v56 = vpop.f32.mrf.mxu0  ;;  %3084 = vmatpush3.bf16.msra.mxu1 %v1242_v52 }
 0x3f8   : > { %3085 = vmatprep.subr.bf16.mxu1 %v1241_v55 }
 0x3f9   : > { %v1226_v57 = vpop.f32.mrf.mxu0 }
 0x3fb   : > { %v3078_v59 = vpop.f32.mrf.mxu0  ;;  %3086 = vmatpush3.bf16.msra.mxu1 %v1241_v55 }
 0x3fc   : > { %v1248_v61 = vpack.c.bf16 %v3078_v59, %v3077_v56 }
 0x3fd   : > { %v1229_v62 = vpop.f32.mrf.mxu0 }
 0x3fe   : > { %3088 = vmatmul.mubr.msk.bf16.vlgmr.msra.gmra.mxu1 %vm857_vm0, %v3386_v58  ;;  %3095 = vmatprep.subr.bf16.mxu1 %v1248_v61  ;;  %v1247_v63 = vpack.c.bf16 %v1229_v62, %v1226_v57 }
 0x3ff   : > { %3096 = vmatpush3.bf16.msra.mxu1 %v1248_v61  ;;  %3091 = vmatprep.mubr.msk.bf16.mxu1 %vm857_vm0, %v3387_v60 }
 0x400   : > { %3097 = vmatprep.subr.bf16.mxu1 %v1247_v63 }
 0x403   : > { %3098 = vmatpush3.bf16.msra.mxu1 %v1247_v63 }
 0x404   : > { %3099 = vmatprep.subr.bf16.mxu1 %v1246_v0 }
 0x406   : > { %3092 = vmatmul.mubr.msk.bf16.gmra.mxu1 %vm857_vm0, %v3388_v1 }
 0x407   : > { %3100 = vmatpush3.bf16.msra.mxu1 %v1246_v0  ;;  %3103 = vmatprep.mubr.msk.bf16.mxu1 %vm857_vm0, %v3389_v2 }
 0x408   : > { %3101 = vmatprep.subr.bf16.mxu1 %v1245_v3 }
 0x40b   : > { %3102 = vmatpush3.bf16.msra.mxu1 %v1245_v3  ;;  %v3401_v3 = vld [vmem:[%s3901_s14] sm:$0xff]  }
 0x40e   : > { %3104 = vmatmul.mubr.msk.bf16.vlgmr.msra.gmra.mxu1 %vm857_vm0, %v3390_v4  ;;  %v3409_v4 = vld [vmem:[#allocation8 + $0xf8] sm:$0xff]  }
 0x40f   : > { %3107 = vmatprep.mubr.msk.bf16.mxu1 %vm857_vm0, %v3391_v5  ;;  %v3410_v5 = vld [vmem:[#allocation8 + $0xf0] sm:$0xff]   ;;  %3175 = vmatprep.subr.bf16.mxu0 %v3409_v4 }
 0x416   : > { %3108 = vmatmul.mubr.msk.bf16.gmra.mxu1 %vm857_vm0, %v3392_v6  ;;  %v3411_v6 = vld [vmem:[#allocation8 + $0xe8] sm:$0xff]  }
 0x417   : > { %3151 = vmatprep.mubr.msk.bf16.mxu1 %vm857_vm0, %v3401_v3 }
 0x4be   : > { %v3089_v10 = vpop.f32.mrf.mxu1 }
 0x4bf   : > { %v1469_v16 = vadd.f32 %v3089_v10, %v2728_v12 }
 0x4c0   : > { %v1331_v11 = vpop.f32.mrf.mxu1 }
 0x4c1   : > { %v1467_v14 = vadd.f32 %v2728_v12, %v1331_v11  ;;  %v1485_v23 = vmax.f32 %v1469_v16, 0.0 }
 0x4c2   : > { %v3090_v13 = vpop.f32.mrf.mxu1 }
 0x4c3   : > { %v1470_v15 = vadd.f32 %v3090_v13, %v2728_v12  ;;  %v1483_v21 = vmax.f32 %v1467_v14, 0.0 }
 0x4c4   : > { %v1334_v17 = vpop.f32.mrf.mxu1 }
 0x4c5   : > { %v1468_v18 = vadd.f32 %v2728_v12, %v1334_v17  ;;  %v1486_v19 = vmax.f32 %v1470_v15, 0.0 }
 0x4c6   : > { %v3093_v20 = vpop.f32.mrf.mxu1 }
 0x4c7   : > { %v1484_v22 = vmax.f32 %v1468_v18, 0.0  ;;  %v1500_v26 = vpack.c.bf16 %v1486_v19, %v1485_v23  ;;  %v1473_v30 = vadd.f32 %v3093_v20, %v2728_v12 }
 0x4c8   : > { %v1347_v24 = vpop.f32.mrf.mxu1 }
 0x4c9   : > { %v1499_v25 = vpack.c.bf16 %v1484_v22, %v1483_v21  ;;  %v1471_v28 = vadd.f32 %v2728_v12, %v1347_v24  ;;  %v1489_v37 = vmax.f32 %v1473_v30, 0.0 }
 0x4ca   : > { %v3094_v27 = vpop.f32.mrf.mxu1 }
 0x4cb   : > { %v1474_v29 = vadd.f32 %v3094_v27, %v2728_v12  ;;  %3127 = vmatprep.mubr.bf16.mxu0 %v1499_v25  ;;  %v1487_v35 = vmax.f32 %v1471_v28, 0.0  ;;  %v3402_v27 = vld [vmem:[%s3901_s14 + $0x8] sm:$0xff]  }
 0x4cc   : > { %v1350_v31 = vpop.f32.mrf.mxu1  ;;  %3128 = vmatmul.mubr.bf16.vlgmr.msra.gmra.mxu0 %v1500_v26 }
 0x4cd   : > { %v1472_v32 = vadd.f32 %v2728_v12, %v1350_v31  ;;  %v1490_v33 = vmax.f32 %v1474_v29, 0.0  ;;  %3176 = vmatpush3.bf16.msra.mxu0 %v3409_v4  ;;  %v3403_v29 = vld [vmem:[%s3901_s14 + $0x10] sm:$0xff]  }
 0x4ce   : > { %v3105_v34 = vpop.f32.mrf.mxu1  ;;  %3177 = vmatprep.subr.bf16.mxu0 %v3410_v5 }
 0x4cf   : > { %v1488_v36 = vmax.f32 %v1472_v32, 0.0  ;;  %v1502_v40 = vpack.c.bf16 %v1490_v33, %v1489_v37  ;;  %v1477_v44 = vadd.f32 %v3105_v34, %v2728_v12  ;;  %v3404_v34 = vld [vmem:[%s3901_s14 + $0x18] sm:$0xff]   ;;  %v3406_v37 = vld [vmem:[%s3901_s14 + $0x28] sm:$0xff]  }
 0x4d0   : > { %v1428_v38 = vpop.f32.mrf.mxu1 }
 0x4d1   : > { %v1501_v39 = vpack.c.bf16 %v1488_v36, %v1487_v35  ;;  %v1475_v42 = vadd.f32 %v2728_v12, %v1428_v38  ;;  %v1493_v51 = vmax.f32 %v1477_v44, 0.0  ;;  %3178 = vmatpush3.bf16.msra.mxu0 %v3410_v5  ;;  %v3405_v35 = vld [vmem:[%s3901_s14 + $0x20] sm:$0xff]   ;;  %v3407_v38 = vld [vmem:[%s3901_s14 + $0x30] sm:$0xff]  }
 0x4d2   : > { %v3106_v41 = vpop.f32.mrf.mxu1  ;;  %3179 = vmatprep.subr.bf16.mxu0 %v3411_v6 }
 0x4d3   : > { %v1478_v43 = vadd.f32 %v3106_v41, %v2728_v12  ;;  %3131 = vmatprep.mubr.bf16.mxu0 %v1501_v39  ;;  %v1491_v49 = vmax.f32 %v1475_v42, 0.0  ;;  %v3408_v39 = vld [vmem:[%s3901_s14 + $0x38] sm:$0xff]   ;;  %v3415_v41 = vld [vmem:[#allocation8 + $0xc8] sm:$0xff]   ;;  %v3416_v42 = vld [vmem:[#allocation8 + $0xc0] sm:$0xff]  }
 0x4d4   : > { %v1431_v45 = vpop.f32.mrf.mxu1  ;;  %3132 = vmatmul.mubr.bf16.gmra.mxu0 %v1502_v40  ;;  %v3414_v40 = vld [vmem:[#allocation8 + $0xd0] sm:$0xff]  }
 0x4d5   : > { %v1476_v46 = vadd.f32 %v2728_v12, %v1431_v45  ;;  %v1494_v47 = vmax.f32 %v1478_v43, 0.0  ;;  %3180 = vmatpush3.bf16.msra.mxu0 %v3411_v6  ;;  %v2754_v45 = vld [vmem:[%s4058_s5 + $0x2] ss:$0 sm:$0xff] }
 0x4d6   : > { %v3109_v48 = vpop.f32.mrf.mxu1  ;;  %3181 = vmatprep.subr.bf16.mxu0 %v3412_v7 }
 0x4d7   : > { %v1492_v50 = vmax.f32 %v1476_v46, 0.0  ;;  %v1504_v54 = vpack.c.bf16 %v1494_v47, %v1493_v51  ;;  %v1481_v58 = vadd.f32 %v3109_v48, %v2728_v12 }
 0x4d8   : > { %v1444_v52 = vpop.f32.mrf.mxu1 }
 0x4d9   : > { %v1503_v53 = vpack.c.bf16 %v1492_v50, %v1491_v49  ;;  %v1479_v56 = vadd.f32 %v2728_v12, %v1444_v52  ;;  %v1497_v0 = vmax.f32 %v1481_v58, 0.0  ;;  %3182 = vmatpush3.bf16.msra.mxu0 %v3412_v7 }
 0x4da   : > { %v3110_v55 = vpop.f32.mrf.mxu1  ;;  %3183 = vmatprep.subr.bf16.mxu0 %v3413_v8 }
 0x4db   : > { %v1482_v57 = vadd.f32 %v3110_v55, %v2728_v12  ;;  %3135 = vmatprep.mubr.bf16.mxu0 %v1503_v53  ;;  %v1495_v62 = vmax.f32 %v1479_v56, 0.0 }
 0x4dc   : > { %v1447_v59 = vpop.f32.mrf.mxu1  ;;  %3136 = vmatmul.mubr.bf16.gmra.mxu0 %v1504_v54 }
 0x4dd   : > { %v1480_v60 = vadd.f32 %v2728_v12, %v1447_v59  ;;  %v1498_v61 = vmax.f32 %v1482_v57, 0.0  ;;  %3184 = vmatpush3.bf16.msra.mxu0 %v3413_v8 }
 0x4de   : > { %3185 = vmatprep.subr.bf16.mxu0 %v3414_v40 }
 0x4df   : > { %v1496_v63 = vmax.f32 %v1480_v60, 0.0  ;;  %v1506_v2 = vpack.c.bf16 %v1498_v61, %v1497_v0 }
 0x4e1   : > { %v1505_v1 = vpack.c.bf16 %v1496_v63, %v1495_v62  ;;  %3186 = vmatpush3.bf16.msra.mxu0 %v3414_v40 }
 0x4e2   : > { %3187 = vmatprep.subr.bf16.mxu0 %v3415_v41 }
 0x4e3   : > { %3139 = vmatprep.mubr.bf16.mxu0 %v1505_v1 }
 0x4e4   : > { %3140 = vmatmul.mubr.bf16.gmra.mxu0 %v1506_v2 }
 0x4e5   : > { %3188 = vmatpush3.bf16.msra.mxu0 %v3415_v41 }
 0x4e6   : > { %3189 = vmatprep.subr.bf16.mxu0 %v3416_v42 }
 0x4e9   : > { %3190 = vmatpush3.bf16.msra.mxu0 %v3416_v42 }
 0x58c   : > { %v3129_v9 = vpop.f32.mrf.mxu0 }
 0x58e   : > { %v1606_v10 = vpop.f32.mrf.mxu0 }
 0x590   : > { %v3130_v11 = vpop.f32.mrf.mxu0 }
 0x591   : > { %v1670_v21 = vpack.c.bf16 %v3130_v11, %v3129_v9 }
 0x592   : > { %v1609_v12 = vpop.f32.mrf.mxu0 }
 0x593   : > { %v1669_v24 = vpack.c.bf16 %v1609_v12, %v1606_v10 }
 0x594   : > { %v3133_v13 = vpop.f32.mrf.mxu0 }
 0x596   : > { %v1622_v14 = vpop.f32.mrf.mxu0 }
 0x598   : > { %v3134_v15 = vpop.f32.mrf.mxu0 }
 0x599   : > { %v1672_v16 = vpack.c.bf16 %v3134_v15, %v3133_v13 }
 0x59a   : > { %v1625_v17 = vpop.f32.mrf.mxu0 }
 0x59b   : > { %v1671_v18 = vpack.c.bf16 %v1625_v17, %v1622_v14  ;;  %3143 = vmatprep.subr.bf16.mxu1 %v1672_v16 }
 0x59c   : > { %v3137_v19 = vpop.f32.mrf.mxu0  ;;  %3144 = vmatpush3.bf16.msra.mxu1 %v1672_v16 }
 0x59d   : > { %3145 = vmatprep.subr.bf16.mxu1 %v1671_v18 }
 0x59e   : > { %v1638_v20 = vpop.f32.mrf.mxu0 }
 0x5a0   : > { %v3138_v22 = vpop.f32.mrf.mxu0  ;;  %3146 = vmatpush3.bf16.msra.mxu1 %v1671_v18 }
 0x5a1   : > { %3147 = vmatprep.subr.bf16.mxu1 %v1670_v21  ;;  %v1674_v33 = vpack.c.bf16 %v3138_v22, %v3137_v19 }
 0x5a2   : > { %v1641_v23 = vpop.f32.mrf.mxu0 }
 0x5a3   : > { %v1673_v36 = vpack.c.bf16 %v1641_v23, %v1638_v20 }
 0x5a4   : > { %v3141_v25 = vpop.f32.mrf.mxu0  ;;  %3148 = vmatpush3.bf16.msra.mxu1 %v1670_v21 }
 0x5a5   : > { %3149 = vmatprep.subr.bf16.mxu1 %v1669_v24 }
 0x5a6   : > { %v1654_v26 = vpop.f32.mrf.mxu0 }
 0x5a8   : > { %v3142_v28 = vpop.f32.mrf.mxu0  ;;  %3150 = vmatpush3.bf16.msra.mxu1 %v1669_v24 }
 0x5a9   : > { %v1676_v30 = vpack.c.bf16 %v3142_v28, %v3141_v25 }
 0x5aa   : > { %v1657_v31 = vpop.f32.mrf.mxu0 }
 0x5ab   : > { %3152 = vmatmul.mubr.msk.bf16.vlgmr.msra.gmra.mxu1 %vm857_vm0, %v3402_v27  ;;  %3159 = vmatprep.subr.bf16.mxu1 %v1676_v30  ;;  %v1675_v32 = vpack.c.bf16 %v1657_v31, %v1654_v26 }
 0x5ac   : > { %3160 = vmatpush3.bf16.msra.mxu1 %v1676_v30  ;;  %3155 = vmatprep.mubr.msk.bf16.mxu1 %vm857_vm0, %v3403_v29 }
 0x5ad   : > { %3161 = vmatprep.subr.bf16.mxu1 %v1675_v32 }
 0x5b0   : > { %3162 = vmatpush3.bf16.msra.mxu1 %v1675_v32 }
 0x5b1   : > { %3163 = vmatprep.subr.bf16.mxu1 %v1674_v33 }
 0x5b3   : > { %3156 = vmatmul.mubr.msk.bf16.gmra.mxu1 %vm857_vm0, %v3404_v34 }
 0x5b4   : > { %3164 = vmatpush3.bf16.msra.mxu1 %v1674_v33  ;;  %3167 = vmatprep.mubr.msk.bf16.mxu1 %vm857_vm0, %v3405_v35 }
 0x5b5   : > { %3165 = vmatprep.subr.bf16.mxu1 %v1673_v36 }
 0x5b8   : > { %3166 = vmatpush3.bf16.msra.mxu1 %v1673_v36  ;;  %v3417_v36 = vld [vmem:[%s3901_s14] sm:$0xff]  }
 0x5bb   : > { %3168 = vmatmul.mubr.msk.bf16.vlgmr.msra.gmra.mxu1 %vm857_vm0, %v3406_v37 }
 0x5bc   : > { %3171 = vmatprep.mubr.msk.bf16.mxu1 %vm857_vm0, %v3407_v38 }
 0x5c3   : > { %3172 = vmatmul.mubr.msk.bf16.gmra.mxu1 %vm857_vm0, %v3408_v39 }
 0x5c4   : > { %3215 = vmatprep.mubr.msk.bf16.mxu1 %vm857_vm0, %v3417_v36 }
 0x66b   : > { %v3153_v43 = vpop.f32.mrf.mxu1 }
 0x66c   : > { %v1897_v49 = vadd.f32 %v3153_v43, %v2754_v45 }
 0x66d   : > { %v1759_v44 = vpop.f32.mrf.mxu1 }
 0x66e   : > { %v1895_v47 = vadd.f32 %v2754_v45, %v1759_v44  ;;  %v1913_v56 = vmax.f32 %v1897_v49, 0.0 }
 0x66f   : > { %v3154_v46 = vpop.f32.mrf.mxu1 }
 0x670   : > { %v1898_v48 = vadd.f32 %v3154_v46, %v2754_v45  ;;  %v1911_v54 = vmax.f32 %v1895_v47, 0.0 }
 0x671   : > { %v1762_v50 = vpop.f32.mrf.mxu1 }
 0x672   : > { %v1896_v51 = vadd.f32 %v2754_v45, %v1762_v50  ;;  %v1914_v52 = vmax.f32 %v1898_v48, 0.0 }
 0x673   : > { %v3157_v53 = vpop.f32.mrf.mxu1 }
 0x674   : > { %v1912_v55 = vmax.f32 %v1896_v51, 0.0  ;;  %v1928_v59 = vpack.c.bf16 %v1914_v52, %v1913_v56  ;;  %v1901_v63 = vadd.f32 %v3157_v53, %v2754_v45 }
 0x675   : > { %v1775_v57 = vpop.f32.mrf.mxu1 }
 0x676   : > { %v1927_v58 = vpack.c.bf16 %v1912_v55, %v1911_v54  ;;  %v1899_v61 = vadd.f32 %v2754_v45, %v1775_v57  ;;  %v1917_v6 = vmax.f32 %v1901_v63, 0.0  ;;  %v3418_v55 = vld [vmem:[%s3901_s14 + $0x8] sm:$0xff]   ;;  %v3419_v57 = vld [vmem:[%s3901_s14 + $0x10] sm:$0xff]   ;;  %v3421_v63 = vld [vmem:[%s3901_s14 + $0x20] sm:$0xff]  }
 0x677   : > { %v3158_v60 = vpop.f32.mrf.mxu1 }
 0x678   : > { %v1902_v62 = vadd.f32 %v3158_v60, %v2754_v45  ;;  %3191 = vmatprep.mubr.bf16.mxu0 %v1927_v58  ;;  %v1915_v4 = vmax.f32 %v1899_v61, 0.0 }
 0x679   : > { %v1778_v0 = vpop.f32.mrf.mxu1  ;;  %3192 = vmatmul.mubr.bf16.vlgmr.msra.gmra.mxu0 %v1928_v59 }
 0x67a   : > { %v1900_v1 = vadd.f32 %v2754_v45, %v1778_v0  ;;  %v1918_v2 = vmax.f32 %v1902_v62, 0.0  ;;  %v3420_v62 = vld [vmem:[%s3901_s14 + $0x18] sm:$0xff]  }
 0x67b   : > { %v3169_v3 = vpop.f32.mrf.mxu1 }
 0x67c   : > { %v1916_v5 = vmax.f32 %v1900_v1, 0.0  ;;  %v1930_v9 = vpack.c.bf16 %v1918_v2, %v1917_v6  ;;  %v1905_v13 = vadd.f32 %v3169_v3, %v2754_v45  ;;  %v3422_v1 = vld [vmem:[%s3901_s14 + $0x28] sm:$0xff]   ;;  %v3423_v2 = vld [vmem:[%s3901_s14 + $0x30] sm:$0xff]   ;;  %v3424_v3 = vld [vmem:[%s3901_s14 + $0x38] sm:$0xff]   ;;  %s4010_s14 = scalar_lea.hbm %s4061_s8, %s2791_s18 }
 0x67d   : > { %v1856_v7 = vpop.f32.mrf.mxu1  ;;  %v3426_v6 = vld [vmem:[#allocation10 + $0x30] sm:$0xff]  }
 0x67e   : > { %v1929_v8 = vpack.c.bf16 %v1916_v5, %v1915_v4  ;;  %v1903_v11 = vadd.f32 %v2754_v45, %v1856_v7  ;;  %v1921_v20 = vmax.f32 %v1905_v13, 0.0  ;;  %v3425_v4 = vld [vmem:[#allocation10 + $0x38] sm:$0xff]   ;;  %v3652_v5 = vmov 0.0   ;;  %v3427_v7 = vld [vmem:[#allocation10 + $0x28] sm:$0xff]  }
 0x67f   : > { %v3170_v10 = vpop.f32.mrf.mxu1  ;;  %3239 = vmatprep.subr.bf16.mxu0 %v3652_v5 }
 0x680   : > { %v1906_v12 = vadd.f32 %v3170_v10, %v2754_v45  ;;  %3195 = vmatprep.mubr.bf16.mxu0 %v1929_v8  ;;  %v1919_v18 = vmax.f32 %v1903_v11, 0.0  ;;  %3240 = vmatpush3.bf16.msra.mxu0 %v3425_v4  ;;  %v3428_v8 = vld [vmem:[#allocation10 + $0x20] sm:$0xff]   ;;  %v3430_v10 = vld [vmem:[#allocation10 + $0x10] sm:$0xff]   ;;  %v3431_v11 = vld [vmem:[#allocation10 + $0x8] sm:$0xff]  }
 0x681   : > { %v1859_v14 = vpop.f32.mrf.mxu1  ;;  %3196 = vmatmul.mubr.bf16.gmra.mxu0 %v1930_v9  ;;  %3241 = vmatprep.subr.bf16.mxu0 %v3652_v5  ;;  %v3429_v9 = vld [vmem:[#allocation10 + $0x18] sm:$0xff]  }
 0x682   : > { %v1904_v15 = vadd.f32 %v2754_v45, %v1859_v14  ;;  %v1922_v16 = vmax.f32 %v1906_v12, 0.0  ;;  %v3432_v12 = vld [vmem:[#allocation10] sm:$0xff]  }
 0x683   : > { %v3173_v17 = vpop.f32.mrf.mxu1 }
 0x684   : > { %v1920_v19 = vmax.f32 %v1904_v15, 0.0  ;;  %v1932_v23 = vpack.c.bf16 %v1922_v16, %v1921_v20  ;;  %v1909_v27 = vadd.f32 %v3173_v17, %v2754_v45  ;;  %3242 = vmatpush3.bf16.msra.mxu0 %v3426_v6  ;;  %v2780_v15 = vld [vmem:[%s4058_s5 + $0x3] ss:$0 sm:$0xff] }
 0x685   : > { %v1872_v21 = vpop.f32.mrf.mxu1  ;;  %3243 = vmatprep.subr.bf16.mxu0 %v3652_v5 }
 0x686   : > { %v1931_v22 = vpack.c.bf16 %v1920_v19, %v1919_v18  ;;  %v1907_v25 = vadd.f32 %v2754_v45, %v1872_v21  ;;  %v1925_v33 = vmax.f32 %v1909_v27, 0.0 }
 0x687   : > { %v3174_v24 = vpop.f32.mrf.mxu1 }
 0x688   : > { %v1910_v26 = vadd.f32 %v3174_v24, %v2754_v45  ;;  %3199 = vmatprep.mubr.bf16.mxu0 %v1931_v22  ;;  %v1923_v31 = vmax.f32 %v1907_v25, 0.0  ;;  %3244 = vmatpush3.bf16.msra.mxu0 %v3427_v7 }
 0x689   : > { %v1875_v28 = vpop.f32.mrf.mxu1  ;;  %3200 = vmatmul.mubr.bf16.gmra.mxu0 %v1932_v23  ;;  %3245 = vmatprep.subr.bf16.mxu0 %v3652_v5 }
 0x68a   : > { %v1908_v29 = vadd.f32 %v2754_v45, %v1875_v28  ;;  %v1926_v30 = vmax.f32 %v1910_v26, 0.0 }
 0x68c   : > { %v1924_v32 = vmax.f32 %v1908_v29, 0.0  ;;  %v1934_v35 = vpack.c.bf16 %v1926_v30, %v1925_v33  ;;  %3246 = vmatpush3.bf16.msra.mxu0 %v3428_v8 }
 0x68d   : > { %3247 = vmatprep.subr.bf16.mxu0 %v3652_v5 }
 0x68e   : > { %v1933_v34 = vpack.c.bf16 %v1924_v32, %v1923_v31 }
 0x690   : > { %3203 = vmatprep.mubr.bf16.mxu0 %v1933_v34  ;;  %3248 = vmatpush3.bf16.msra.mxu0 %v3429_v9 }
 0x691   : > { %3204 = vmatmul.mubr.bf16.gmra.mxu0 %v1934_v35  ;;  %3249 = vmatprep.subr.bf16.mxu0 %v3652_v5 }
 0x692   : > { %3255 = vmatprep.mubr.msk.bf16.mxu0 %vm3653_vm1, %v3652_v5 }
 0x694   : > { %3250 = vmatpush3.bf16.msra.mxu0 %v3430_v10 }
 0x695   : > { %3251 = vmatprep.subr.bf16.mxu0 %v3652_v5 }
 0x698   : > { %3252 = vmatpush3.bf16.msra.mxu0 %v3431_v11 }
 0x699   : > { %3253 = vmatprep.subr.bf16.mxu0 %v3652_v5 }
 0x69c   : > { %3254 = vmatpush3.bf16.msra.mxu0 %v3432_v12 }
 0x739   : > { %v3193_v37 = vpop.f32.mrf.mxu0 }
 0x73b   : > { %v2034_v38 = vpop.f32.mrf.mxu0 }
 0x73d   : > { %v3194_v39 = vpop.f32.mrf.mxu0 }
 0x73e   : > { %v2098_v49 = vpack.c.bf16 %v3194_v39, %v3193_v37 }
 0x73f   : > { %v2037_v40 = vpop.f32.mrf.mxu0 }
 0x740   : > { %v2097_v52 = vpack.c.bf16 %v2037_v40, %v2034_v38 }
 0x741   : > { %v3197_v41 = vpop.f32.mrf.mxu0 }
 0x743   : > { %v2050_v42 = vpop.f32.mrf.mxu0 }
 0x745   : > { %v3198_v43 = vpop.f32.mrf.mxu0 }
 0x746   : > { %v2100_v44 = vpack.c.bf16 %v3198_v43, %v3197_v41 }
 0x747   : > { %v2053_v45 = vpop.f32.mrf.mxu0 }
 0x748   : > { %v2099_v46 = vpack.c.bf16 %v2053_v45, %v2050_v42  ;;  %3207 = vmatprep.subr.bf16.mxu1 %v2100_v44 }
 0x749   : > { %v3201_v47 = vpop.f32.mrf.mxu0  ;;  %3208 = vmatpush3.bf16.msra.mxu1 %v2100_v44 }
 0x74a   : > { %3209 = vmatprep.subr.bf16.mxu1 %v2099_v46 }
 0x74b   : > { %v2066_v48 = vpop.f32.mrf.mxu0 }
 0x74d   : > { %v3202_v50 = vpop.f32.mrf.mxu0  ;;  %3210 = vmatpush3.bf16.msra.mxu1 %v2099_v46 }
 0x74e   : > { %3211 = vmatprep.subr.bf16.mxu1 %v2098_v49  ;;  %v2102_v61 = vpack.c.bf16 %v3202_v50, %v3201_v47 }
 0x74f   : > { %v2069_v51 = vpop.f32.mrf.mxu0 }
 0x750   : > { %v2101_v0 = vpack.c.bf16 %v2069_v51, %v2066_v48 }
 0x751   : > { %v3205_v53 = vpop.f32.mrf.mxu0  ;;  %3212 = vmatpush3.bf16.msra.mxu1 %v2098_v49 }
 0x752   : > { %3213 = vmatprep.subr.bf16.mxu1 %v2097_v52 }
 0x753   : > { %v2082_v54 = vpop.f32.mrf.mxu0 }
 0x755   : > { %v3206_v56 = vpop.f32.mrf.mxu0  ;;  %3214 = vmatpush3.bf16.msra.mxu1 %v2097_v52 }
 0x756   : > { %v2104_v58 = vpack.c.bf16 %v3206_v56, %v3205_v53 }
 0x757   : > { %v2085_v59 = vpop.f32.mrf.mxu0 }
 0x758   : > { %3216 = vmatmul.mubr.msk.bf16.vlgmr.msra.gmra.mxu1 %vm857_vm0, %v3418_v55  ;;  %3223 = vmatprep.subr.bf16.mxu1 %v2104_v58  ;;  %v2103_v60 = vpack.c.bf16 %v2085_v59, %v2082_v54 }
 0x759   : > { %3224 = vmatpush3.bf16.msra.mxu1 %v2104_v58  ;;  %3219 = vmatprep.mubr.msk.bf16.mxu1 %vm857_vm0, %v3419_v57 }
 0x75a   : > { %3225 = vmatprep.subr.bf16.mxu1 %v2103_v60 }
 0x75d   : > { %3226 = vmatpush3.bf16.msra.mxu1 %v2103_v60 }
 0x75e   : > { %3227 = vmatprep.subr.bf16.mxu1 %v2102_v61 }
 0x760   : > { %3220 = vmatmul.mubr.msk.bf16.gmra.mxu1 %vm857_vm0, %v3420_v62 }
 0x761   : > { %3228 = vmatpush3.bf16.msra.mxu1 %v2102_v61  ;;  %3231 = vmatprep.mubr.msk.bf16.mxu1 %vm857_vm0, %v3421_v63 }
 0x762   : > { %3229 = vmatprep.subr.bf16.mxu1 %v2101_v0 }
 0x765   : > { %3230 = vmatpush3.bf16.msra.mxu1 %v2101_v0 }
 0x768   : > { %3232 = vmatmul.mubr.msk.bf16.vlgmr.msra.gmra.mxu1 %vm857_vm0, %v3422_v1 }
 0x769   : > { %3235 = vmatprep.mubr.msk.bf16.mxu1 %vm857_vm0, %v3423_v2 }
 0x770   : > { %3236 = vmatmul.mubr.msk.bf16.gmra.mxu1 %vm857_vm0, %v3424_v3 }
 0x818   : > { %v3217_v13 = vpop.f32.mrf.mxu1 }
 0x819   : > { %v2325_v19 = vadd.f32 %v3217_v13, %v2780_v15 }
 0x81a   : > { %v2187_v14 = vpop.f32.mrf.mxu1 }
 0x81b   : > { %v2323_v17 = vadd.f32 %v2780_v15, %v2187_v14  ;;  %v2341_v26 = vmax.f32 %v2325_v19, 0.0 }
 0x81c   : > { %v3218_v16 = vpop.f32.mrf.mxu1 }
 0x81d   : > { %v2339_v22 = vmax.f32 %v2323_v17, 0.0  ;;  %v2326_v23 = vadd.f32 %v3218_v16, %v2780_v15 }
 0x81e   : > { %v2190_v18 = vpop.f32.mrf.mxu1 }
 0x81f   : > { %v2324_v20 = vadd.f32 %v2780_v15, %v2190_v18  ;;  %v2342_v30 = vmax.f32 %v2326_v23, 0.0 }
 0x820   : > { %v3221_v21 = vpop.f32.mrf.mxu1 }
 0x821   : > { %v2340_v24 = vmax.f32 %v2324_v20, 0.0  ;;  %v2329_v33 = vadd.f32 %v3221_v21, %v2780_v15 }
 0x822   : > { %v2203_v25 = vpop.f32.mrf.mxu1 }
 0x823   : > { %v2355_v27 = vadd.f32 %v2340_v24, %v2339_v22  ;;  %v2327_v28 = vadd.f32 %v2780_v15, %v2203_v25  ;;  %v2345_v42 = vmax.f32 %v2329_v33, 0.0 }
 0x824   : > { %v3222_v29 = vpop.f32.mrf.mxu1 }
 0x825   : > { %v2356_v31 = vadd.f32 %v2355_v27, %v2341_v26  ;;  %v2343_v34 = vmax.f32 %v2327_v28, 0.0  ;;  %v2330_v39 = vadd.f32 %v3222_v29, %v2780_v15 }
 0x826   : > { %v2206_v32 = vpop.f32.mrf.mxu1 }
 0x827   : > { %v2357_v35 = vadd.f32 %v2356_v31, %v2342_v30  ;;  %v2328_v36 = vadd.f32 %v2780_v15, %v2206_v32  ;;  %v2346_v45 = vmax.f32 %v2330_v39, 0.0  ;;  %v2781_v32 = vld [vmem:[%s4060_s7] ss:$0 sm:$0xff] }
 0x828   : > { %v3233_v37 = vpop.f32.mrf.mxu1 }
 0x829   : > { %v2358_v38 = vadd.f32 %v2357_v35, %v2343_v34  ;;  %v2344_v40 = vmax.f32 %v2328_v36, 0.0  ;;  %v2333_v50 = vadd.f32 %v3233_v37, %v2780_v15 }
 0x82a   : > { %v2284_v41 = vpop.f32.mrf.mxu1 }
 0x82b   : > { %v2359_v43 = vadd.f32 %v2358_v38, %v2344_v40  ;;  %v2331_v47 = vadd.f32 %v2780_v15, %v2284_v41  ;;  %v2349_v58 = vmax.f32 %v2333_v50, 0.0 }
 0x82c   : > { %v3234_v44 = vpop.f32.mrf.mxu1 }
 0x82d   : > { %v2360_v46 = vadd.f32 %v2359_v43, %v2345_v42  ;;  %v2347_v54 = vmax.f32 %v2331_v47, 0.0  ;;  %v2334_v55 = vadd.f32 %v3234_v44, %v2780_v15 }
 0x82e   : > { %v2287_v48 = vpop.f32.mrf.mxu1 }
 0x82f   : > { %v2361_v49 = vadd.f32 %v2360_v46, %v2346_v45  ;;  %v2332_v51 = vadd.f32 %v2780_v15, %v2287_v48  ;;  %v2350_v63 = vmax.f32 %v2334_v55, 0.0 }
 0x830   : > { %v3237_v52 = vpop.f32.mrf.mxu1 }
 0x831   : > { %v2362_v53 = vrot.slane %v2361_v49, 4  ;;  %v2348_v56 = vmax.f32 %v2332_v51, 0.0  ;;  %v2337_v2 = vadd.f32 %v3237_v52, %v2780_v15 }
 0x832   : > { %v2300_v57 = vpop.f32.mrf.mxu1 }
 0x833   : > { %v2368_v59 = vadd.f32 %v2348_v56, %v2347_v54  ;;  %v2335_v60 = vadd.f32 %v2780_v15, %v2300_v57  ;;  %v2363_v62 = vadd.f32 %v2362_v53, %v2361_v49  ;;  %v2353_v10 = vmax.f32 %v2337_v2, 0.0 }
 0x834   : > { %v3238_v61 = vpop.f32.mrf.mxu1 }
 0x835   : > { %v2369_v0 = vadd.f32 %v2368_v59, %v2349_v58  ;;  %v2351_v3 = vmax.f32 %v2335_v60, 0.0  ;;  %v2364_v6 = vrot.slane %v2363_v62, 2  ;;  %v2338_v8 = vadd.f32 %v3238_v61, %v2780_v15 }
 0x836   : > { %v2303_v1 = vpop.f32.mrf.mxu1 }
 0x837   : > { %v2370_v4 = vadd.f32 %v2369_v0, %v2350_v63  ;;  %v2336_v5 = vadd.f32 %v2780_v15, %v2303_v1  ;;  %v2365_v12 = vadd.f32 %v2364_v6, %v2363_v62  ;;  %v2354_v13 = vmax.f32 %v2338_v8, 0.0 }
 0x839   : > { %v2371_v7 = vadd.f32 %v2370_v4, %v2351_v3  ;;  %v2352_v9 = vmax.f32 %v2336_v5, 0.0  ;;  %v2366_v17 = vrot.slane %v2365_v12, 1 }
 0x83b   : > { %v2372_v11 = vadd.f32 %v2371_v7, %v2352_v9  ;;  %v2367_v20 = vadd.f32 %v2366_v17, %v2365_v12 }
 0x83d   : > { %v2373_v14 = vadd.f32 %v2372_v11, %v2353_v10  ;;  %v2381_v23 = vmul.f32 0.015625, %v2367_v20 }
 0x83f   : > { %v2374_v16 = vadd.f32 %v2373_v14, %v2354_v13  ;;  %v2383_v26 = vpack.c.bf16 %v2381_v23, %v2381_v23 }
 0x841   : > { %v2375_v18 = vrot.slane %v2374_v16, 4  ;;  %v2410_v28 = vunpack.c.l.b16 %v2383_v26 }
 0x843   : > { %v2376_v19 = vadd.f32 %v2375_v18, %v2374_v16 }
 0x845   : > { %v2377_v21 = vrot.slane %v2376_v19, 2 }
 0x847   : > { %v2378_v22 = vadd.f32 %v2377_v21, %v2376_v19 }
 0x849   : > { %v2379_v24 = vrot.slane %v2378_v22, 1 }
 0x84b   : > { %v2380_v25 = vadd.f32 %v2379_v24, %v2378_v22 }
 0x84d   : > { %v2382_v15 = vmul.f32 0.015625, %v2380_v25 }
 0x84f   : > { %v2384_v27 = vpack.c.bf16 %v2382_v15, %v2382_v15 }
 0x851   : > { %v2411_v29 = vunpack.c.l.b16 %v2384_v27 }
 0x853   : > { %v2413_v30 = vsel %vm2412_vm2, %v2411_v29, %v2410_v28 }
 0x854   : > { %v2414_v31 = vpack.c.b16 %v2413_v30, %v2413_v30 }
 0x856   : > { %3256 = vmatmul.mubr.bf16.vlgmr.msra.gmra.mxu0 %v2414_v31 }
 0x916   : > { %v2498_v33 = vpop.f32.mrf.mxu0 }
 0x917   : > { %v2499_v34 = vadd.f32 %v2781_v32, %v2498_v33 }
 0x918   : > { %v3257_v35 = vpop.f32.mrf.mxu0 }
 0x919   : > { %2504 = vst [vmem:[%s408_s29] sm:$0x3] %v2499_v34 }
 0x91a   : > { %v2501_v36 = vpop.f32.mrf.mxu0 }
 0x91b   : > { %3580 = shalt.err (!%p3577_p6)
}
 0x91c   : > { %s3581_s19 = scalar_lea.hbm %s4010_s14, 32  ;;  %s3585_s4 = scalar_lea.hbm %s4061_s8, 64 }
 0x91d   : > { %p3582_p7 = scmp.ne.s32.totalorder %s4010_s14, %s3581_s19  ;;  %p3586_p11 = scmp.lt.s32.totalorder %s4010_s14, %s4061_s8 }
 0x91e   : > { %p3587_p3 = scmp.lt.s32.totalorder %s3585_s4, %s3581_s19 }
 0x91f   : > { %p3583_p5 = pnand %p3582_p7, %p4096_p13 }
 0x920   : > { %p3588_p12 = por %p3587_p3, %p3586_p11 }
 0x921   : > { %p3584_p8 = pneg %p3583_p5 }
 0x923   : > { %p3589_p9 = pnand %p3588_p12, %p3584_p8 }
 0x925   : > { %3592 = shalt.err (!%p3589_p9)
}
 0x926   : > { %3275 = dma.vmem_to_hbm [thread:$0]  (%p4096_p13), %s4012_s10, 32, %s4010_s14, %s2506_s11   ;;  %v3258_v37 = vpop.f32.mrf.mxu0 }
 0x927 PF: > { %s2531_s20 = sand.u32 1, %s3631_s27   ;;  %p4097_p0 = scmp.ne.s32.totalorder %s4078_s12, 0 }
 0x928   : > { %p4098_p2 = scmp.ge.s32.totalorder %s3643_s30, 2  ;;  %s2532_s17 = scalar_lea.sflag [#allocation4], %s2531_s20 }
 0x92a   : > { %p3295_p10 = pnand %p4098_p2, %p4097_p0 }
 0x92c   : > { %p3296_p1 = pneg %p3295_p10 }
 0x92e   : > { %3626 = dma.done.wait (%p3296_p1), %s2532_s17, 32  }
 0x92f   : > { %3628 = vsyncadd (%p3296_p1), %s2532_s17, 4294967264  ;;  %s4099_s30 = sld [smem:[#allocation18_spill]]  ;;  %s4102_s27 = smov %s3635_s28 }
 0x930   : > { %s4100_s16 = sld [smem:[#allocation17_spill]] }
 0x931   : > { %s4101_s29 = sld [smem:[#allocation19_spill]] }
 0x935   : > { %p25_p4 = scmp.ge.s32.totalorder %s4099_s30, 4  }
 0x936   : > { %s4103_s28 = smov %s4100_s16 }
 0x937   :  { %27 = sbr.rel (!%p25_p4) target bundleno = 13 (0xd), region = 128 }
 0x93c   :  { %2537 = vsyncpa [#allocation3], 1 }
 0x93d   :  { %2539 = vsyncpa [#allocation3 + $0x1], 1 }
 0x93e   :  { %2540 = vsyncpa [#allocation6], 1 }
 0x93f   :  { %2542 = vsyncpa [#allocation6 + $0x1], 1 }
 0x940   :  { %2543 = vsyncpa [#allocation9], 1 }
 0x941   :  { %2544 = vsyncpa [#allocation4], 1 }
 0x942   :  { %2546 = vsyncpa [#allocation4 + $0x1], 1 }

</bundles_post_ra>
